<compile_context>
chip_gen: v6e
topology: v6e:2x2x1
jax: 0.10.0
libtpu: 0.0.40
codegen_flags: <defaults>
</compile_context>

<pallas_src>
import functools

import jax
import jax.numpy as jnp
import numpy as np
from jax import lax
from jax.experimental import pallas as pl
from jax.experimental.pallas import tpu as pltpu


# ------------------------------- kernel ----------------------------------

def _upsample_kernel(xpad_ref, w_ref, b_ref, a_ref, out_ref, patch_ref):
    """One (batch image, row-tile) step of Conv3x3+bias -> PReLU -> PixelShuffle.

    xpad_ref : (H+2, W+2, Cin)  bf16  whole zero-padded image (resident per n)
    w_ref    : (9*Cin, r*r*C)   bf16  K-packed taps; out-channels in (ih,iw,c) order
    b_ref    : (1, r*r*C)       f32   conv bias (same permutation)
    a_ref    : (1, r*r*C)       f32   PReLU slopes broadcast r*r times (permuted)
    out_ref  : (TH, r, W, r*C)  f32   output row slab of the upsampled image
    patch_ref: (TH, W, 9*Cin)   bf16  scratch im2col patch
    """
    TH, r, W, rC = out_ref.shape
    Cin = xpad_ref.shape[-1]

    i = pl.program_id(1)
    row0 = pl.multiple_of(i * TH, TH)        # first output row of this tile

    # im2col: pack the 9 conv taps along the MXU contraction (K) dimension.
    k = 0
    for dy in range(3):
        for dx in range(3):
            patch_ref[:, :, k * Cin:(k + 1) * Cin] = (
                xpad_ref[pl.ds(row0 + dy, TH), dx:dx + W, :])
            k += 1
    patch = patch_ref[...].reshape(TH * W, 9 * Cin)          # bf16

    # One bf16 MXU matmul with f32 accumulation, then bias + PReLU.
    acc = jnp.dot(patch, w_ref[...], preferred_element_type=jnp.float32)
    acc = acc + b_ref[...]                                   # conv bias
    acc = jnp.where(acc > 0.0, acc, a_ref[...] * acc)        # PReLU

    # PixelShuffle: output channels were pre-permuted to (ih, iw, c) order, so
    # the ih-slab of columns is already laid out as (W, r, C) per pixel row and
    # reshapes contiguously into an output row slab (no transpose needed).
    for ih in range(r):
        slab = acc[:, ih * rC:(ih + 1) * rC]                 # (TH*W, r*C)
        out_ref[:, ih:ih + 1, :, :] = slab.reshape(TH, 1, W, rC)


# ------------------------------- wrapper ----------------------------------

def upsample_block_nhwc(x, w_hwio, bias, alpha, *, scale=2, tile_h=8):
    """x: (N, H, W, C) f32. w_hwio: (3, 3, C, C*scale^2). bias: (C*scale^2,).
    alpha: (C,) PReLU slopes. Returns (N, H*scale, W*scale, C) f32."""
    N, H, W, C = x.shape
    r = scale
    Cout = C * r * r

    # Row tile that divides H (keeps the demo simple; halo handled in-kernel).
    th = min(tile_h, H)
    while H % th:
        th -= 1

    # Permute conv output channels from PyTorch's (c, ih, iw) order to
    # (ih, iw, c): PixelShuffle then becomes a contiguous in-kernel reshape.
    new_idx = np.arange(Cout)
    ih_i = new_idx // (r * C)
    iw_i = (new_idx // C) % r
    c_i = new_idx % C
    old_idx = c_i * (r * r) + ih_i * r + iw_i

    w_packed = jnp.asarray(w_hwio)[..., old_idx].reshape(9 * C, Cout)
    w_packed = w_packed.astype(jnp.bfloat16)
    b_perm = jnp.asarray(bias)[old_idx].reshape(1, Cout).astype(jnp.float32)
    a_perm = jnp.tile(jnp.asarray(alpha), r * r).reshape(1, Cout)
    a_perm = a_perm.astype(jnp.float32)

    # The conv's "padding=1": pad once, in bf16 (halves HBM traffic for x).
    xpad = jnp.pad(x.astype(jnp.bfloat16), ((0, 0), (1, 1), (1, 1), (0, 0)))

    out5 = pl.pallas_call(
        _upsample_kernel,
        out_shape=jax.ShapeDtypeStruct((N, H, r, W, r * C), jnp.float32),
        grid_spec=pltpu.PrefetchScalarGridSpec(
            num_scalar_prefetch=0,
            grid=(N, H // th),
            in_specs=[
                # Whole padded image resident per n (index ignores the H tile),
                # sliced with a 1-row halo inside the kernel.
                pl.BlockSpec((None, H + 2, W + 2, C), lambda n, i: (n, 0, 0, 0)),
                pl.BlockSpec((9 * C, Cout), lambda n, i: (0, 0)),
                pl.BlockSpec((1, Cout), lambda n, i: (0, 0)),
                pl.BlockSpec((1, Cout), lambda n, i: (0, 0)),
            ],
            out_specs=pl.BlockSpec((None, th, r, W, r * C),
                                   lambda n, i: (n, i, 0, 0, 0)),
            scratch_shapes=[pltpu.VMEM((th, W, 9 * C), jnp.bfloat16)],
        ),
        compiler_params=pltpu.CompilerParams(
            dimension_semantics=("parallel", "parallel"),
            vmem_limit_bytes=32 * 1024 * 1024,
        ),
    )(xpad, w_packed, b_perm, a_perm)

    # (N, H, r, W, r*C) -> (N, H*r, W*r, C): contiguous, free reshape.
    return out5.reshape(N, H * r, W * r, C)


@functools.partial(jax.jit, static_argnames=("scale", "tile_h"))
def upsample_block(x_nchw, params, scale=2, tile_h=8):
    """PyTorch-facing entry point: NCHW in, NCHW out."""
    x_nhwc = jnp.transpose(x_nchw, (0, 2, 3, 1))
    y = upsample_block_nhwc(x_nhwc, params["w"], params["b"], params["alpha"],
                            scale=scale, tile_h=tile_h)
    return jnp.transpose(y, (0, 3, 1, 2))


# --------------------------- pure-JAX reference ----------------------------

def _reference_nhwc(x, w_hwio, bias, alpha, r):
    y = lax.conv_general_dilated(
        x, w_hwio, window_strides=(1, 1), padding="SAME",
        dimension_numbers=("NHWC", "HWIO", "NHWC"))
    y = y + bias.reshape(1, 1, 1, -1)
    N, H, W, Co = y.shape
    C = Co // (r * r)
    # PixelShuffle (PyTorch channel ordering c*r^2 + ih*r + iw).
    y = y.reshape(N, H, W, C, r, r).transpose(0, 1, 4, 2, 5, 3)
    y = y.reshape(N, H * r, W * r, C)
    a = alpha.reshape(1, 1, 1, -1)
    return jnp.where(y > 0, y, a * y)


# --------------------------------- main ------------------------------------

if __name__ == "__main__":
    N, C, H, W, r = 2, 4, 16, 16, 2   # NCHW input, like the PyTorch module

    key = jax.random.PRNGKey(0)
    kx, kw, kb = jax.random.split(key, 3)

    x_nchw = jax.random.normal(kx, (N, C, H, W), jnp.float32)

    # Deterministic synthetic parameters (shapes match nn.Conv2d(C, C*r^2, 3,
    # padding=1, bias=True) in HWIO layout and nn.PReLU(C)); no checkpoints.
    params = {
        "w": 0.1 * jax.random.normal(kw, (3, 3, C, C * r * r), jnp.float32),
        "b": 0.1 * jax.random.normal(kb, (C * r * r,), jnp.float32),
        "alpha": jnp.full((C,), 0.25, jnp.float32),   # PReLU default init
    }

    out = upsample_block(x_nchw, params, scale=r, tile_h=8)
    out = jax.block_until_ready(out)
    assert out.shape == (N, C, H * r, W * r)

    # Correctness check against a pure-JAX f32 reference (kernel uses bf16 MXU).
    x_nhwc = jnp.transpose(x_nchw, (0, 2, 3, 1))
    ref = _reference_nhwc(x_nhwc, params["w"], params["b"], params["alpha"], r)
    ref = jnp.transpose(ref, (0, 3, 1, 2))
    if not jnp.allclose(out, ref, atol=2e-2, rtol=2e-2):
        max_err = float(jnp.max(jnp.abs(out - ref)))
        raise AssertionError(f"Pallas output mismatch, max abs err = {max_err}")

    print("KERNEL_OK")
</pallas_src>

<mosaic_0001>
module attributes {stable_mosaic.version = 11 : i64} {
  func.func @_upsample_kernel(%arg0: i32, %arg1: i32, %arg2: memref<1x18x18x4xbf16, #tpu.memory_space<vmem>>, %arg3: memref<36x16xbf16, #tpu.memory_space<vmem>>, %arg4: memref<1x16xf32, #tpu.memory_space<vmem>>, %arg5: memref<1x16xf32, #tpu.memory_space<vmem>>, %arg6: memref<1x8x2x16x8xf32, #tpu.memory_space<vmem>>, %arg7: memref<8x16x36xbf16, #tpu.memory_space<vmem>>) attributes {dimension_semantics = [#tpu.dimension_semantics<parallel>, #tpu.dimension_semantics<parallel>], iteration_bounds = array<i64: 2, 2>, scalar_prefetch = 0 : i64, scratch_operands = 1 : i64, tpu.core_type = #tpu.core_type<tc>, window_params = [{transform_indices = @transform_0, window_bounds = array<i64: 1, 18, 18, 4>}, {pipeline_mode = #tpu.pipeline_mode<synchronous>, transform_indices = @transform_1, window_bounds = array<i64: 36, 16>}, {pipeline_mode = #tpu.pipeline_mode<synchronous>, transform_indices = @transform_2, window_bounds = array<i64: 1, 16>}, {pipeline_mode = #tpu.pipeline_mode<synchronous>, transform_indices = @transform_3, window_bounds = array<i64: 1, 16>}, {transform_indices = @transform_4, window_bounds = array<i64: 1, 8, 2, 16, 8>}]} {
    %c8_i32 = arith.constant 8 : i32
    %0 = arith.muli %arg1, %c8_i32 : i32
    %1 = tpu.assume_multiple %0, 8 : i32
    %c0_i32 = arith.constant 0 : i32
    %2 = arith.addi %1, %c0_i32 : i32
    %c0 = arith.constant 0 : index
    %3 = arith.index_cast %2 : i32 to index
    %c0_0 = arith.constant 0 : index
    %c0_1 = arith.constant 0 : index
    %4 = vector.load %arg2[%c0, %3, %c0_0, %c0_1] : memref<1x18x18x4xbf16, #tpu.memory_space<vmem>>, vector<1x8x16x4xbf16>
    %5 = vector.shape_cast %4 : vector<1x8x16x4xbf16> to vector<8x16x4xbf16>
    %c0_2 = arith.constant 0 : index
    %c0_3 = arith.constant 0 : index
    %c0_4 = arith.constant 0 : index
    %6 = vector.load %arg7[%c0_2, %c0_3, %c0_4] : memref<8x16x36xbf16, #tpu.memory_space<vmem>>, vector<8x16x4xbf16>
    tpu.vector_store %arg7[%c0_2, %c0_3, %c0_4], %5 {strides = array<i32>} : memref<8x16x36xbf16, #tpu.memory_space<vmem>>, vector<8x16x4xbf16>,
    %c0_i32_5 = arith.constant 0 : i32
    %7 = arith.addi %1, %c0_i32_5 : i32
    %c0_6 = arith.constant 0 : index
    %8 = arith.index_cast %7 : i32 to index
    %c1 = arith.constant 1 : index
    %c0_7 = arith.constant 0 : index
    %9 = vector.load %arg2[%c0_6, %8, %c1, %c0_7] : memref<1x18x18x4xbf16, #tpu.memory_space<vmem>>, vector<1x8x16x4xbf16>
    %10 = vector.shape_cast %9 : vector<1x8x16x4xbf16> to vector<8x16x4xbf16>
    %c0_8 = arith.constant 0 : index
    %c0_9 = arith.constant 0 : index
    %c4 = arith.constant 4 : index
    %11 = vector.load %arg7[%c0_8, %c0_9, %c4] : memref<8x16x36xbf16, #tpu.memory_space<vmem>>, vector<8x16x4xbf16>
    tpu.vector_store %arg7[%c0_8, %c0_9, %c4], %10 {strides = array<i32>} : memref<8x16x36xbf16, #tpu.memory_space<vmem>>, vector<8x16x4xbf16>,
    %c0_i32_10 = arith.constant 0 : i32
    %12 = arith.addi %1, %c0_i32_10 : i32
    %c0_11 = arith.constant 0 : index
    %13 = arith.index_cast %12 : i32 to index
    %c2 = arith.constant 2 : index
    %c0_12 = arith.constant 0 : index
    %14 = vector.load %arg2[%c0_11, %13, %c2, %c0_12] : memref<1x18x18x4xbf16, #tpu.memory_space<vmem>>, vector<1x8x16x4xbf16>
    %15 = vector.shape_cast %14 : vector<1x8x16x4xbf16> to vector<8x16x4xbf16>
    %c0_13 = arith.constant 0 : index
    %c0_14 = arith.constant 0 : index
    %c8 = arith.constant 8 : index
    %16 = vector.load %arg7[%c0_13, %c0_14, %c8] : memref<8x16x36xbf16, #tpu.memory_space<vmem>>, vector<8x16x4xbf16>
    tpu.vector_store %arg7[%c0_13, %c0_14, %c8], %15 {strides = array<i32>} : memref<8x16x36xbf16, #tpu.memory_space<vmem>>, vector<8x16x4xbf16>,
    %c1_i32 = arith.constant 1 : i32
    %17 = arith.addi %1, %c1_i32 : i32
    %c0_15 = arith.constant 0 : index
    %18 = arith.index_cast %17 : i32 to index
    %c0_16 = arith.constant 0 : index
    %c0_17 = arith.constant 0 : index
    %19 = vector.load %arg2[%c0_15, %18, %c0_16, %c0_17] : memref<1x18x18x4xbf16, #tpu.memory_space<vmem>>, vector<1x8x16x4xbf16>
    %20 = vector.shape_cast %19 : vector<1x8x16x4xbf16> to vector<8x16x4xbf16>
    %c0_18 = arith.constant 0 : index
    %c0_19 = arith.constant 0 : index
    %c12 = arith.constant 12 : index
    %21 = vector.load %arg7[%c0_18, %c0_19, %c12] : memref<8x16x36xbf16, #tpu.memory_space<vmem>>, vector<8x16x4xbf16>
    tpu.vector_store %arg7[%c0_18, %c0_19, %c12], %20 {strides = array<i32>} : memref<8x16x36xbf16, #tpu.memory_space<vmem>>, vector<8x16x4xbf16>,
    %c1_i32_20 = arith.constant 1 : i32
    %22 = arith.addi %1, %c1_i32_20 : i32
    %c0_21 = arith.constant 0 : index
    %23 = arith.index_cast %22 : i32 to index
    %c1_22 = arith.constant 1 : index
    %c0_23 = arith.constant 0 : index
    %24 = vector.load %arg2[%c0_21, %23, %c1_22, %c0_23] : memref<1x18x18x4xbf16, #tpu.memory_space<vmem>>, vector<1x8x16x4xbf16>
    %25 = vector.shape_cast %24 : vector<1x8x16x4xbf16> to vector<8x16x4xbf16>
    %c0_24 = arith.constant 0 : index
    %c0_25 = arith.constant 0 : index
    %c16 = arith.constant 16 : index
    %26 = vector.load %arg7[%c0_24, %c0_25, %c16] : memref<8x16x36xbf16, #tpu.memory_space<vmem>>, vector<8x16x4xbf16>
    tpu.vector_store %arg7[%c0_24, %c0_25, %c16], %25 {strides = array<i32>} : memref<8x16x36xbf16, #tpu.memory_space<vmem>>, vector<8x16x4xbf16>,
    %c1_i32_26 = arith.constant 1 : i32
    %27 = arith.addi %1, %c1_i32_26 : i32
    %c0_27 = arith.constant 0 : index
    %28 = arith.index_cast %27 : i32 to index
    %c2_28 = arith.constant 2 : index
    %c0_29 = arith.constant 0 : index
    %29 = vector.load %arg2[%c0_27, %28, %c2_28, %c0_29] : memref<1x18x18x4xbf16, #tpu.memory_space<vmem>>, vector<1x8x16x4xbf16>
    %30 = vector.shape_cast %29 : vector<1x8x16x4xbf16> to vector<8x16x4xbf16>
    %c0_30 = arith.constant 0 : index
    %c0_31 = arith.constant 0 : index
    %c20 = arith.constant 20 : index
    %31 = vector.load %arg7[%c0_30, %c0_31, %c20] : memref<8x16x36xbf16, #tpu.memory_space<vmem>>, vector<8x16x4xbf16>
    tpu.vector_store %arg7[%c0_30, %c0_31, %c20], %30 {strides = array<i32>} : memref<8x16x36xbf16, #tpu.memory_space<vmem>>, vector<8x16x4xbf16>,
    %c2_i32 = arith.constant 2 : i32
    %32 = arith.addi %1, %c2_i32 : i32
    %c0_32 = arith.constant 0 : index
    %33 = arith.index_cast %32 : i32 to index
    %c0_33 = arith.constant 0 : index
    %c0_34 = arith.constant 0 : index
    %34 = vector.load %arg2[%c0_32, %33, %c0_33, %c0_34] : memref<1x18x18x4xbf16, #tpu.memory_space<vmem>>, vector<1x8x16x4xbf16>
    %35 = vector.shape_cast %34 : vector<1x8x16x4xbf16> to vector<8x16x4xbf16>
    %c0_35 = arith.constant 0 : index
    %c0_36 = arith.constant 0 : index
    %c24 = arith.constant 24 : index
    %36 = vector.load %arg7[%c0_35, %c0_36, %c24] : memref<8x16x36xbf16, #tpu.memory_space<vmem>>, vector<8x16x4xbf16>
    tpu.vector_store %arg7[%c0_35, %c0_36, %c24], %35 {strides = array<i32>} : memref<8x16x36xbf16, #tpu.memory_space<vmem>>, vector<8x16x4xbf16>,
    %c2_i32_37 = arith.constant 2 : i32
    %37 = arith.addi %1, %c2_i32_37 : i32
    %c0_38 = arith.constant 0 : index
    %38 = arith.index_cast %37 : i32 to index
    %c1_39 = arith.constant 1 : index
    %c0_40 = arith.constant 0 : index
    %39 = vector.load %arg2[%c0_38, %38, %c1_39, %c0_40] : memref<1x18x18x4xbf16, #tpu.memory_space<vmem>>, vector<1x8x16x4xbf16>
    %40 = vector.shape_cast %39 : vector<1x8x16x4xbf16> to vector<8x16x4xbf16>
    %c0_41 = arith.constant 0 : index
    %c0_42 = arith.constant 0 : index
    %c28 = arith.constant 28 : index
    %41 = vector.load %arg7[%c0_41, %c0_42, %c28] : memref<8x16x36xbf16, #tpu.memory_space<vmem>>, vector<8x16x4xbf16>
    tpu.vector_store %arg7[%c0_41, %c0_42, %c28], %40 {strides = array<i32>} : memref<8x16x36xbf16, #tpu.memory_space<vmem>>, vector<8x16x4xbf16>,
    %c2_i32_43 = arith.constant 2 : i32
    %42 = arith.addi %1, %c2_i32_43 : i32
    %c0_44 = arith.constant 0 : index
    %43 = arith.index_cast %42 : i32 to index
    %c2_45 = arith.constant 2 : index
    %c0_46 = arith.constant 0 : index
    %44 = vector.load %arg2[%c0_44, %43, %c2_45, %c0_46] : memref<1x18x18x4xbf16, #tpu.memory_space<vmem>>, vector<1x8x16x4xbf16>
    %45 = vector.shape_cast %44 : vector<1x8x16x4xbf16> to vector<8x16x4xbf16>
    %c0_47 = arith.constant 0 : index
    %c0_48 = arith.constant 0 : index
    %c32 = arith.constant 32 : index
    %46 = vector.load %arg7[%c0_47, %c0_48, %c32] : memref<8x16x36xbf16, #tpu.memory_space<vmem>>, vector<8x16x4xbf16>
    tpu.vector_store %arg7[%c0_47, %c0_48, %c32], %45 {strides = array<i32>} : memref<8x16x36xbf16, #tpu.memory_space<vmem>>, vector<8x16x4xbf16>,
    %c0_49 = arith.constant 0 : index
    %c0_50 = arith.constant 0 : index
    %c0_51 = arith.constant 0 : index
    %47 = vector.load %arg7[%c0_49, %c0_50, %c0_51] : memref<8x16x36xbf16, #tpu.memory_space<vmem>>, vector<8x16x36xbf16>
    %48 = vector.shape_cast %47 : vector<8x16x36xbf16> to vector<128x36xbf16>
    %c0_52 = arith.constant 0 : index
    %c0_53 = arith.constant 0 : index
    %49 = vector.load %arg3[%c0_52, %c0_53] : memref<36x16xbf16, #tpu.memory_space<vmem>>, vector<36x16xbf16>
    %cst = arith.constant dense<0.000000e+00> : vector<128x16xf32>
    %50 = tpu.matmul %48, %49, %cst {dimension_numbers = #tpu.dot_dimension_numbers<[1], [0], [0], [1], [0, 0, 1, 1], [], []>} : vector<128x36xbf16>, vector<36x16xbf16>, vector<128x16xf32> -> vector<128x16xf32>
    %c0_54 = arith.constant 0 : index
    %c0_55 = arith.constant 0 : index
    %51 = vector.load %arg4[%c0_54, %c0_55] : memref<1x16xf32, #tpu.memory_space<vmem>>, vector<1x16xf32>
    %52 = vector.broadcast %51 : vector<1x16xf32> to vector<128x16xf32>
    %53 = arith.addf %50, %52 : vector<128x16xf32>
    %cst_56 = arith.constant 0.000000e+00 : f32
    %54 = vector.broadcast %cst_56 : f32 to vector<128x16xf32>
    %55 = arith.cmpf ogt, %53, %54 : vector<128x16xf32>
    %c0_57 = arith.constant 0 : index
    %c0_58 = arith.constant 0 : index
    %56 = vector.load %arg5[%c0_57, %c0_58] : memref<1x16xf32, #tpu.memory_space<vmem>>, vector<1x16xf32>
    %57 = vector.broadcast %56 : vector<1x16xf32> to vector<128x16xf32>
    %58 = arith.mulf %57, %53 : vector<128x16xf32>
    %59 = arith.select %55, %53, %58 : vector<128x16xi1>, vector<128x16xf32>
    %60 = vector.extract_strided_slice %59 {offsets = [0, 0], sizes = [128, 8], strides = [1, 1]} : vector<128x16xf32> to vector<128x8xf32>
    %61 = vector.shape_cast %60 : vector<128x8xf32> to vector<8x1x16x8xf32>
    %c0_59 = arith.constant 0 : index
    %c0_60 = arith.constant 0 : index
    %c0_61 = arith.constant 0 : index
    %c0_62 = arith.constant 0 : index
    %c0_63 = arith.constant 0 : index
    %62 = vector.load %arg6[%c0_59, %c0_60, %c0_61, %c0_62, %c0_63] : memref<1x8x2x16x8xf32, #tpu.memory_space<vmem>>, vector<1x8x1x16x8xf32>
    %63 = vector.shape_cast %62 : vector<1x8x1x16x8xf32> to vector<8x1x16x8xf32>
    %64 = vector.shape_cast %61 : vector<8x1x16x8xf32> to vector<1x8x1x16x8xf32>
    tpu.vector_store %arg6[%c0_59, %c0_60, %c0_61, %c0_62, %c0_63], %64 {strides = array<i32>} : memref<1x8x2x16x8xf32, #tpu.memory_space<vmem>>, vector<1x8x1x16x8xf32>,
    %65 = vector.extract_strided_slice %59 {offsets = [0, 8], sizes = [128, 8], strides = [1, 1]} : vector<128x16xf32> to vector<128x8xf32>
    %66 = vector.shape_cast %65 : vector<128x8xf32> to vector<8x1x16x8xf32>
    %c0_64 = arith.constant 0 : index
    %c0_65 = arith.constant 0 : index
    %c1_66 = arith.constant 1 : index
    %c0_67 = arith.constant 0 : index
    %c0_68 = arith.constant 0 : index
    %67 = vector.load %arg6[%c0_64, %c0_65, %c1_66, %c0_67, %c0_68] : memref<1x8x2x16x8xf32, #tpu.memory_space<vmem>>, vector<1x8x1x16x8xf32>
    %68 = vector.shape_cast %67 : vector<1x8x1x16x8xf32> to vector<8x1x16x8xf32>
    %69 = vector.shape_cast %66 : vector<8x1x16x8xf32> to vector<1x8x1x16x8xf32>
    tpu.vector_store %arg6[%c0_64, %c0_65, %c1_66, %c0_67, %c0_68], %69 {strides = array<i32>} : memref<1x8x2x16x8xf32, #tpu.memory_space<vmem>>, vector<1x8x1x16x8xf32>,
    return
  }
  func.func @transform_0(%arg0: i32, %arg1: i32) -> (i32, i32, i32, i32) {
    %c0_i32 = arith.constant 0 : i32
    %c0_i32_0 = arith.constant 0 : i32
    %c0_i32_1 = arith.constant 0 : i32
    %c0_i32_2 = arith.constant 0 : i32
    return %arg0, %c0_i32, %c0_i32_0, %c0_i32_1 : i32, i32, i32, i32
  }
  func.func @transform_1(%arg0: i32, %arg1: i32) -> (i32, i32) {
    %c0_i32 = arith.constant 0 : i32
    %c0_i32_0 = arith.constant 0 : i32
    %c0_i32_1 = arith.constant 0 : i32
    return %c0_i32, %c0_i32_0 : i32, i32
  }
  func.func @transform_2(%arg0: i32, %arg1: i32) -> (i32, i32) {
    %c0_i32 = arith.constant 0 : i32
    %c0_i32_0 = arith.constant 0 : i32
    %c0_i32_1 = arith.constant 0 : i32
    return %c0_i32, %c0_i32_0 : i32, i32
  }
  func.func @transform_3(%arg0: i32, %arg1: i32) -> (i32, i32) {
    %c0_i32 = arith.constant 0 : i32
    %c0_i32_0 = arith.constant 0 : i32
    %c0_i32_1 = arith.constant 0 : i32
    return %c0_i32, %c0_i32_0 : i32, i32
  }
  func.func @transform_4(%arg0: i32, %arg1: i32) -> (i32, i32, i32, i32, i32) {
    %c0_i32 = arith.constant 0 : i32
    %c0_i32_0 = arith.constant 0 : i32
    %c0_i32_1 = arith.constant 0 : i32
    %c0_i32_2 = arith.constant 0 : i32
    return %arg0, %arg1, %c0_i32, %c0_i32_0, %c0_i32_1 : i32, i32, i32, i32, i32
  }
}

</mosaic_0001>

<bundles_post_ra>
// kernel: tile.9
= control target key start
LH: loop header
LB: loop body
LE: loop exit
PB: predicated region body
PF: predicated region fallthrough
CT: control target
= control target key end

     0   :  { %vm8_vm0 = vcmask 31744   ;;  %s40_s8 = smov 4   ;;  %s41_s9 = smov 8   ;;  %vm14_vm1 = vcmask 130144   ;;  %vm20_vm2 = vcmask 97344   ;;  %vm26_vm3 = vcmask 64544   ;;  %s58_s0 = inlined_call_operand.vmem [shape: f32[4,4], index: 0, kind: input, shape index: {}]   ;;  %s59_s1 = inlined_call_operand.vmem [shape: f32[1,16], index: 1, kind: output, shape index: {}]  }
   0x1   :  { %v5_v0 = vld [vmem:[%s58_s0] sm:$0xf]  ;;  %s39_s0 = smov 12  }
   0x2   :  { %6 = vst [vmem:[#allocation1] sm:$0xf] %v5_v0 }
   0x9   :  { %v11_v1 = vld [vmem:[#allocation1 + $0x3] sm:$0x1]   ;;  %v23_v2 = vld [vmem:[#allocation1 + $0x1] sm:$0x1]   ;;  %v7_v3 = vld [vmem:[#allocation1] sm:$0x1]  }
   0xa   :  { %12 = vrot.lane.b32.xlu0 %v11_v1, %s39_s0  ;;  %24 = vrot.lane.b32.xlu1 %v23_v2, %s40_s8  ;;  %v17_v4 = vld [vmem:[#allocation1 + $0x2] sm:$0x1]   ;;  %9 = vst.msk [vmem:[#allocation0] sm:$0x1] %vm8_vm0, %v7_v3  }
   0xe   :  { %18 = vrot.lane.b32.xlu0 %v17_v4, %s41_s9 }
  0x7c   :  { %v13_v5 = vpop.permute.xlu0 %12   ;;  %v25_v6 = vpop.permute.xlu1 %24  }
  0x7d   :  { %15 = vst.msk [vmem:[#allocation0] sm:$0x1] %vm14_vm1, %v13_v5  }
  0x80   :  { %v19_v7 = vpop.permute.xlu0 %18  }
  0x81   :  { %21 = vst.msk [vmem:[#allocation0] sm:$0x1] %vm20_vm2, %v19_v7  }
  0x82   :  { %27 = vst.msk [vmem:[#allocation0] sm:$0x1] %vm26_vm3, %v25_v6  }
  0x89   :  { %v32_v8 = vld [vmem:[#allocation0] sm:$0x1] }
  0x8a   :  { %35 = vst [vmem:[%s59_s1] sm:$0x1] %v32_v8 }

// kernel: tile.8
= control target key start
LH: loop header
LB: loop body
LE: loop exit
PB: predicated region body
PF: predicated region fallthrough
CT: control target
= control target key end

     0   :  { %s22_s0 = inlined_call_operand.vmem [shape: f32[4], index: 0, kind: input, shape index: {}]   ;;  %s23_s1 = inlined_call_operand.vmem [shape: f32[4,4], index: 1, kind: output, shape index: {}]  }
   0x1   :  { %v4_v0 = vld [vmem:[%s22_s0] ss:$0 sm:$0xff] }
   0x2   :  { %5 = vst [vmem:[%s23_s1] sm:$0xf] %v4_v0 }

// kernel: upsample_block.1
= control target key start
LH: loop header
LB: loop body
LE: loop exit
PB: predicated region body
PF: predicated region fallthrough
CT: control target
= control target key end

     0   :  { %s2666_s15 = smov 0   ;;  %s2668_s16 = smov 0   ;;  %s3631_s0 = inlined_call_operand.vmem [shape: bf16[2,18,18,4], index: 0, kind: input, shape index: {}]   ;;  %s3632_s1 = inlined_call_operand.vmem [shape: bf16[36,16], index: 1, kind: input, shape index: {}]   ;;  %s3633_s2 = inlined_call_operand.vmem [shape: f32[1,16], index: 2, kind: input, shape index: {}]   ;;  %s3634_s3 = inlined_call_operand.vmem [shape: f32[1,16], index: 3, kind: input, shape index: {}]   ;;  %s3635_s4 = inlined_call_operand.vmem [shape: f32[2,16,2,16,8], index: 4, kind: output, shape index: {}]  }
   0x1   :  { %s2670_s17 = smov 0   ;;  %s2672_s18 = smov 0  }
   0x2   :  { %s2674_s19 = smov 0  }
   0x3 LB: > { %s23_s20 = sadd.s32 1, %s2622_s17  ;;  %s26_s21 = sadd.s32 1, %s2626_s18  ;;  %s2630_s19 = sphi %s2674_s19, %s14_s19   ;;  %s2626_s18 = sphi %s2672_s18, %s3643_s18   ;;  %s2622_s17 = sphi %s2670_s17, %s3642_s17   ;;  %s2618_s16 = sphi %s2668_s16, %s3641_s16   ;;  %s2614_s15 = sphi %s2666_s15, %s3640_s15  }
   0x4   : > { %p24_p0 = scmp.ge.s32.totalorder %s23_s20, 2  ;;  %p2285_p1 = scmp.ge.s32.totalorder %s2630_s19, 1 }
   0x5   : > { %p176_p2 = scmp.lt.s32.totalorder %s2630_s19, 5 }
   0x6   : > { %s3645_s20 = smov (%p24_p0, %s23_s20), 0  ;;  %s3647_s21 = smov (!%p24_p0, %s26_s21), %s2626_s18 }
   0x7   : > { %p177_p3 = pnand %p2285_p1, %p176_p2  ;;  %p28_p4 = scmp.ge.s32.totalorder %s3647_s21, 2 }
   0x8   : > { %p207_p5 = scmp.lt.s32.totalorder (!%p177_p3), %s2618_s16, 1  ;;  %s2489_s22 = smul.u32 (!%p177_p3), 96, %s2614_s15 }
   0x9   : > { %s3649_s21 = smov (%p28_p4, %s3647_s21), 0  ;;  %180 = sbr.rel (%p177_p3) target bundleno = 730 (0x2da), region = 36 }
   0xa   : > { %s2632_s28 = smov (!%p177_p3), 8   ;;  %s2633_s29 = smov (!%p177_p3), 4  }
   0xb   : > { %s2634_s30 = smov (!%p177_p3), 12   ;;  %s2635_s5 = smov (!%p177_p3), 16  }
   0xc   : > { %s2636_s6 = smov (!%p177_p3), 20   ;;  %s2637_s7 = smov (!%p177_p3), 24  }
   0xd   : > { %s2638_s8 = smov (!%p177_p3), 28   ;;  %s2639_s9 = smov (!%p177_p3), 32  }
   0xe   : > { %s3651_s16 = smov (!%p207_p5, %s2618_s16), 1  ;;  %vm593_vm0 = vcmask 1042432   ;;  %vm594_vm1 = vcmask 1046532   ;;  %vm285_vm3 = vsmask.f32 3328  ;;  %vm244_vm6 = vcmask 27648  }
   0xf   : > { %s2531_s23 = smul.u32 216, %s3651_s16  ;;  %vm2707_vm2 = vmor %vm593_vm0, %vm594_vm1  ;;  %vm286_vm4 = vsmask.f32 7440  ;;  %vm528_vm7 = vcmask 60448   ;;  %vm700_vm8 = vcmask 93248   ;;  %vm1927_vm9 = vcmask 1041408  }
  0x10   : > { %vm2729_vm5 = vmor %vm285_vm3, %vm286_vm4  ;;  %vm801_vm10 = vcmask 126048   ;;  %vm1082_vm11 = vcmask 158848   ;;  %vm1251_vm12 = vcmask 191648   ;;  %vm1352_vm13 = vcmask 224448   ;;  %s2289_s25 = sshll.u32 %s3651_s16, 6 }
  0x11   : > { %s211_s26 = scalar_lea.vmem %s3631_s0, %s2531_s23  ;;  %vm1633_vm14 = vcmask 257248   ;;  %vm1802_vm15 = vcmask 290048   ;;  %vm1902_vm0 = vcmask 293888   ;;  %s2287_s23 = sshll.u32 %s2614_s15, 3 }
  0x12   : > { %s2705_s27 = scalar_lea.vmem %s211_s26, %s2489_s22  ;;  %p215_p6 = scmp.lt.s32.totalorder %s2287_s23, 15 }
  0x13   : > { %v546_v1 = vld [vmem:[%s2705_s27 + $0x4] sm:$0xf]  ;;  %v547_v2 = vld [vmem:[%s2705_s27 + $0x8] sm:$0x1]  ;;  %v545_v3 = vld [vmem:[%s2705_s27] sm:$0xe] }
  0x14   : > { %v598_v4 = vrot.slane %v546_v1, 5  ;;  %v601_v5 = vrot.slane %v547_v2, 5  ;;  %v2294_v6 = vrot.slane %v545_v3, 9  ;;  %v273_v7 = vld [vmem:[%s2705_s27 + $0x30] sm:$0xf]  ;;  %s3653_s23 = smov (!%p215_p6, %s2287_s23), 15 }
  0x15   : > { %v274_v8 = vld [vmem:[%s2705_s27 + $0x34] sm:$0xf]  ;;  %v385_v9 = vshrl.u32 %v273_v7, 16  ;;  %v388_v10 = vshll.u32 %v273_v7, 16  ;;  %v261_v11 = vld [vmem:[%s2705_s27] sm:$0xf] }
  0x16   : > { %v600_v12 = vrot.slane %v598_v4, 4  ;;  %v599_v13 = vsel %vm2707_vm2, %v2294_v6, %v598_v4  ;;  %v394_v14 = vshll.u32 %v274_v8, 16  ;;  %v398_v15 = vshrl.u32 %v274_v8, 16  ;;  %v262_v16 = vld [vmem:[%s2705_s27 + $0x4] sm:$0xf]  ;;  %s2288_s24 = sshll.u32 %s3653_s23, 2 }
  0x17   : > { %652 = vrot.lane.b32.xlu0 %v599_v13, %s2632_s28  ;;  %v387_v17 = vrot.slane %v385_v9, 4  ;;  %v390_v18 = vrot.slane %v388_v10, 5  ;;  %v289_v19 = vshrl.u32 %v261_v11, 16  ;;  %v292_v20 = vshll.u32 %v261_v11, 16  ;;  %v275_v21 = vld [vmem:[%s2705_s27 + $0x38] sm:$0x1] }
  0x18   : > { %v602_v22 = vsel %vm2707_vm2, %v600_v12, %v601_v5  ;;  %v396_v23 = vrot.slane %v394_v14, 5  ;;  %v298_v24 = vshll.u32 %v262_v16, 16  ;;  %v302_v25 = vshrl.u32 %v262_v16, 16  ;;  %v263_v26 = vld [vmem:[%s2705_s27 + $0x8] sm:$0x1] }
  0x19   : > { %654 = vrot.lane.b32.xlu1 %v602_v22, %s2632_s28  ;;  %v391_v27 = vor.u32 %v390_v18, %v387_v17  ;;  %v291_v28 = vrot.slane %v289_v19, 4  ;;  %v294_v29 = vrot.slane %v292_v20, 5  ;;  %v400_v30 = vrot.slane %v398_v15, 4  ;;  %v265_v31 = vld [vmem:[%s2705_s27 + $0x10] sm:$0xf] }
  0x1a   : > { %v300_v33 = vrot.slane %v298_v24, 5  ;;  %v404_v34 = vshll.u32 %v275_v21, 16  ;;  %v304_v35 = vrot.slane %v302_v25, 4  ;;  %v308_v36 = vshll.u32 %v263_v26, 16  ;;  %v266_v40 = vld [vmem:[%s2705_s27 + $0x14] sm:$0x1] }
  0x1b   : > { %v392_v37 = vrot.slane %v391_v27, 4  ;;  %v295_v38 = vor.u32 %v294_v29, %v291_v28  ;;  %v401_v39 = vor.u32 %v400_v30, %v396_v23  ;;  %v322_v41 = vshll.u32 %v265_v31, 16  ;;  %v264_v42 = vld [vmem:[%s2705_s27 + $0xc] sm:$0xf]  ;;  %v277_v47 = vld [vmem:[%s2705_s27 + $0x40] sm:$0xf] }
  0x1c   : > { %v406_v43 = vrot.slane %v404_v34, 5  ;;  %v305_v44 = vor.u32 %v304_v35, %v300_v33  ;;  %v310_v45 = vrot.slane %v308_v36, 5  ;;  %v326_v46 = vshrl.u32 %v265_v31, 16  ;;  %v278_v56 = vld [vmem:[%s2705_s27 + $0x44] sm:$0x1] }
  0x1d   : > { %v397_v48 = vsel %vm2729_vm5, %v392_v37, %v396_v23  ;;  %v296_v49 = vrot.slane %v295_v38, 4  ;;  %v402_v50 = vrot.slane %v401_v39, 4  ;;  %v324_v51 = vrot.slane %v322_v41, 5  ;;  %v276_v61 = vld [vmem:[%s2705_s27 + $0x3c] sm:$0xf] }
  0x1e   : > { %496 = vrot.lane.b32.xlu1 %v397_v48, %s2633_s29  ;;  %v306_v52 = vrot.slane %v305_v44, 4  ;;  %v328_v53 = vrot.slane %v326_v46, 4  ;;  %v332_v54 = vshll.u32 %v266_v40, 16  ;;  %v313_v55 = vshrl.u32 %v264_v42, 16  ;;  %v558_v3 = vld [vmem:[%s2705_s27 + $0x34] sm:$0xf] }
  0x1f   : > { %v301_v57 = vsel %vm2729_vm5, %v296_v49, %v300_v33  ;;  %v407_v58 = vsel %vm2729_vm5, %v402_v50, %v406_v43  ;;  %v316_v59 = vshll.u32 %v264_v42, 16  ;;  %v418_v60 = vshll.u32 %v277_v47, 16  ;;  %v559_v13 = vld [vmem:[%s2705_s27 + $0x38] sm:$0x1]  ;;  %v549_v18 = vld [vmem:[%s2705_s27 + $0x10] sm:$0xf] }
  0x20   : > { %480 = vrot.lane.b32.xlu0 %v301_v57, %s2633_s29  ;;  %v311_v62 = vsel %vm2729_vm5, %v306_v52, %v310_v45  ;;  %v329_v63 = vor.u32 %v328_v53, %v324_v51  ;;  %v334_v1 = vrot.slane %v332_v54, 5  ;;  %v315_v2 = vrot.slane %v313_v55, 4  ;;  %v557_v24 = vld [vmem:[%s2705_s27 + $0x30] sm:$0xe]  ;;  %v550_v30 = vld [vmem:[%s2705_s27 + $0x14] sm:$0x1] }
  0x21   : > { %v318_v4 = vrot.slane %v316_v59, 5  ;;  %v420_v5 = vrot.slane %v418_v60, 5  ;;  %v422_v6 = vshrl.u32 %v277_v47, 16  ;;  %v428_v7 = vshll.u32 %v278_v56, 16  ;;  %v561_v31 = vld [vmem:[%s2705_s27 + $0x40] sm:$0xf] }
  0x22   : > { %498 = vrot.lane.b32.xlu1 %v407_v58, %s2633_s29  ;;  %v330_v8 = vrot.slane %v329_v63, 4  ;;  %v409_v9 = vshrl.u32 %v276_v61, 16  ;;  %v412_v10 = vshll.u32 %v276_v61, 16  ;;  %v626_v14 = vrot.slane %v558_v3, 5  ;;  %v548_v36 = vld [vmem:[%s2705_s27 + $0xc] sm:$0xe] }
  0x23   : > { %v319_v11 = vor.u32 %v318_v4, %v315_v2  ;;  %v424_v12 = vrot.slane %v422_v6, 4  ;;  %v430_v21 = vrot.slane %v428_v7, 5  ;;  %v629_v23 = vrot.slane %v559_v13, 5  ;;  %v562_v41 = vld [vmem:[%s2705_s27 + $0x44] sm:$0x1] }
  0x24   : > { %482 = vrot.lane.b32.xlu0 %v311_v62, %s2633_s29  ;;  %v335_v15 = vsel %vm2729_vm5, %v330_v8, %v334_v1  ;;  %v411_v16 = vrot.slane %v409_v9, 4  ;;  %v414_v17 = vrot.slane %v412_v10, 5  ;;  %v628_v27 = vrot.slane %v626_v14, 4  ;;  %v560_v44 = vld [vmem:[%s2705_s27 + $0x3c] sm:$0xe] }
  0x25   : > { %v320_v19 = vrot.slane %v319_v11, 4  ;;  %v425_v20 = vor.u32 %v424_v12, %v420_v5  ;;  %v605_v28 = vrot.slane %v549_v18, 5  ;;  %v2298_v34 = vrot.slane %v557_v24, 9  ;;  %v2320_v53 = vld [vmem:[%s2705_s27 + $0xc] sm:$0xf] }
  0x26   : > { %486 = vrot.lane.b32.xlu1 %v335_v15, %s2633_s29  ;;  %v415_v22 = vor.u32 %v414_v17, %v411_v16  ;;  %v630_v37 = vsel %vm2707_vm2, %v628_v27, %v629_v23  ;;  %v608_v39 = vrot.slane %v550_v30, 5  ;;  %v633_v40 = vrot.slane %v561_v31, 5  ;;  %v2305_v56 = vld [vmem:[%s2705_s27 + $0x10] sm:$0xf]  ;;  %v2333_v57 = vld [vmem:[%s2705_s27 + $0x40] sm:$0xf] }
  0x27   : > { %v325_v25 = vsel %vm2729_vm5, %v320_v19, %v324_v51  ;;  %v426_v26 = vrot.slane %v425_v20, 4  ;;  %v607_v38 = vrot.slane %v605_v28, 4  ;;  %v627_v42 = vsel %vm2707_vm2, %v2298_v34, %v626_v14  ;;  %v2321_v51 = vld [vmem:[%s2705_s27 + $0x10] sm:$0xf]  ;;  %v2304_v60 = vld [vmem:[%s2705_s27 + $0xc] sm:$0xf] }
  0x28   : > { %484 = vrot.lane.b32.xlu0 %v325_v25, %s2633_s29  ;;  %v416_v29 = vrot.slane %v415_v22, 4  ;;  %v2295_v43 = vrot.slane %v548_v36, 9  ;;  %v635_v46 = vrot.slane %v633_v40, 4  ;;  %v636_v47 = vrot.slane %v562_v41, 5  ;;  %v2332_v61 = vld [vmem:[%s2705_s27 + $0x3c] sm:$0xf] }
  0x29   : > { %v431_v33 = vsel %vm2729_vm5, %v426_v26, %v430_v21  ;;  %v609_v45 = vsel %vm2707_vm2, %v607_v38, %v608_v39  ;;  %v2299_v49 = vrot.slane %v560_v44, 9  ;;  %v852_v54 = vshll.u32 %v2321_v51, 16  ;;  %v2313_v3 = vld [vmem:[%s2705_s27 + $0x40] sm:$0xf]  ;;  %v2322_v4 = vld [vmem:[%s2705_s27 + $0x14] sm:$0x1] }
  0x2a   : > { %502 = vrot.lane.b32.xlu1 %v431_v33, %s2633_s29  ;;  %v421_v35 = vsel %vm2729_vm5, %v416_v29, %v420_v5  ;;  %v606_v48 = vsel %vm2707_vm2, %v2295_v43, %v605_v28  ;;  %v637_v50 = vsel %vm2707_vm2, %v635_v46, %v636_v47  ;;  %v856_v55 = vshrl.u32 %v2321_v51, 16  ;;  %v2324_v9 = vld [vmem:[%s2705_s27 + $0x1c] sm:$0xf]  ;;  %v2323_v15 = vld [vmem:[%s2705_s27 + $0x18] sm:$0xf] }
  0x2b   : > { %v634_v52 = vsel %vm2707_vm2, %v2299_v49, %v633_v40  ;;  %v843_v58 = vshrl.u32 %v2320_v53, 16  ;;  %v846_v59 = vshll.u32 %v2320_v53, 16  ;;  %v2796_v62 = vrot.slane %v852_v54, 5  ;;  %v2312_v10 = vld [vmem:[%s2705_s27 + $0x3c] sm:$0xf] }
  0x2c   : > { %500 = vrot.lane.b32.xlu0 %v421_v35, %s2633_s29  ;;  %v858_v63 = vrot.slane %v856_v55, 4  ;;  %v948_v1 = vshll.u32 %v2333_v57, 16  ;;  %v952_v2 = vshrl.u32 %v2333_v57, 16  ;;  %v939_v7 = vshrl.u32 %v2332_v61, 16  ;;  %v2307_v16 = vld [vmem:[%s2705_s27 + $0x1c] sm:$0xf] }
  0x2d   : > { %v845_v5 = vrot.slane %v843_v58, 4  ;;  %v848_v6 = vrot.slane %v846_v59, 5  ;;  %v942_v8 = vshll.u32 %v2332_v61, 16  ;;  %v862_v12 = vshll.u32 %v2322_v4, 16  ;;  %v2334_v17 = vld [vmem:[%s2705_s27 + $0x44] sm:$0x1] }
  0x2e   : > { %670 = vrot.lane.b32.xlu1 %v630_v37, %s2632_s28  ;;  %v859_v11 = vor.u32 %v858_v63, %v2796_v62  ;;  %v2805_v13 = vrot.slane %v948_v1, 5  ;;  %v954_v14 = vrot.slane %v952_v2, 4  ;;  %v876_v18 = vshll.u32 %v2324_v9, 16  ;;  %v2336_v23 = vld [vmem:[%s2705_s27 + $0x4c] sm:$0xf] }
  0x2f   : > { %v880_v19 = vshrl.u32 %v2324_v9, 16  ;;  %v849_v20 = vor.u32 %v848_v6, %v845_v5  ;;  %v941_v21 = vrot.slane %v939_v7, 4  ;;  %v944_v22 = vrot.slane %v942_v8, 5  ;;  %v2306_v24 = vld [vmem:[%s2705_s27 + $0x18] sm:$0xf] }
  0x30   : > { %668 = vrot.lane.b32.xlu0 %v627_v42, %s2632_s28  ;;  %v2315_v25 = vld [vmem:[%s2705_s27 + $0x4c] sm:$0xf]  ;;  %v867_v26 = vshrl.u32 %v2323_v15, 16  ;;  %v870_v27 = vshll.u32 %v2323_v15, 16  ;;  %v860_v28 = vrot.slane %v859_v11, 4  ;;  %v864_v29 = vrot.slane %v862_v12, 5 }
  0x31   : > { %v955_v30 = vor.u32 %v954_v14, %v2805_v13  ;;  %v958_v31 = vshll.u32 %v2334_v17, 16  ;;  %v2335_v33 = vld [vmem:[%s2705_s27 + $0x48] sm:$0xf]  ;;  %v2325_v34 = vld [vmem:[%s2705_s27 + $0x20] sm:$0x1]  ;;  %v878_v35 = vrot.slane %v876_v18, 5  ;;  %v945_v40 = vor.u32 %v944_v22, %v941_v21 }
  0x32   : > { %658 = vrot.lane.b32.xlu1 %v609_v45, %s2632_s28  ;;  %v882_v36 = vrot.slane %v880_v19, 4  ;;  %v972_v37 = vshll.u32 %v2336_v23, 16  ;;  %v976_v38 = vshrl.u32 %v2336_v23, 16  ;;  %v850_v39 = vrot.slane %v849_v20, 4  ;;  %v2314_v41 = vld [vmem:[%s2705_s27 + $0x48] sm:$0xf] }
  0x33   : > { %v869_v42 = vrot.slane %v867_v26, 4  ;;  %v872_v43 = vrot.slane %v870_v27, 5  ;;  %v963_v44 = vshrl.u32 %v2335_v33, 16  ;;  %v966_v45 = vshll.u32 %v2335_v33, 16  ;;  %v2337_v54 = vld [vmem:[%s2705_s27 + $0x50] sm:$0x1] }
  0x34   : > { %656 = vrot.lane.b32.xlu0 %v606_v48, %s2632_s28  ;;  %v865_v46 = vsel %vm2729_vm5, %v860_v28, %v864_v29  ;;  %v960_v47 = vrot.slane %v958_v31, 5  ;;  %v886_v48 = vshll.u32 %v2325_v34, 16  ;;  %v956_v49 = vrot.slane %v955_v30, 4  ;;  %v2346_v9 = vld [vmem:[%s2705_s27 + $0x14] sm:$0x1] }
  0x35   : > { %v974_v51 = vrot.slane %v972_v37, 5  ;;  %v855_v53 = vsel %vm2729_vm5, %v850_v39, %v2796_v62  ;;  %v946_v55 = vrot.slane %v945_v40, 4  ;;  %v965_v57 = vrot.slane %v963_v44, 4  ;;  %v2345_v62 = vld [vmem:[%s2705_s27 + $0x10] sm:$0xf] }
  0x36   : > { %674 = vrot.lane.b32.xlu1 %v637_v50, %s2632_s28  ;;  %v883_v50 = vor.u32 %v882_v36, %v878_v35  ;;  %v968_v58 = vrot.slane %v966_v45, 5  ;;  %v888_v59 = vrot.slane %v886_v48, 5  ;;  %v982_v1 = vshll.u32 %v2337_v54, 16  ;;  %v2344_v14 = vld [vmem:[%s2705_s27 + $0xc] sm:$0xe] }
  0x37   : > { %v951_v2 = vsel %vm2729_vm5, %v946_v55, %v2805_v13  ;;  %v1149_v8 = vrot.slane %v2345_v62, 5  ;;  %v236_v13 = vld [vmem:[%s2705_s27 + $0x30] sm:$0xf]  ;;  %v228_v15 = vld [vmem:[%s2705_s27] sm:$0xf]  ;;  %v1152_v18 = vrot.slane %v2346_v9, 5 }
  0x38   : > { %672 = vrot.lane.b32.xlu0 %v634_v52, %s2632_s28  ;;  %v978_v52 = vrot.slane %v976_v38, 4  ;;  %v884_v61 = vrot.slane %v883_v50, 4  ;;  %v969_v4 = vor.u32 %v968_v58, %v965_v57  ;;  %v984_v7 = vrot.slane %v982_v1, 5  ;;  %253 = vst.msk [vmem:[#allocation2 + $0x20] sm:$0xf] %vm244_vm6, %v236_v13 }
  0x39   : > { %v1151_v17 = vrot.slane %v1149_v8, 4  ;;  %245 = vst.msk [vmem:[#allocation2] sm:$0xf] %vm244_vm6, %v228_v15  ;;  %v2358_v20 = vld [vmem:[%s2705_s27 + $0x44] sm:$0x1]  ;;  %v2368_v23 = vrot.slane %v2344_v14, 9 }
  0x3a   : > { %755 = vrot.lane.b32.xlu1 %v2305_v56, %s2634_s30  ;;  %v873_v56 = vor.u32 %v872_v43, %v869_v42  ;;  %v979_v63 = vor.u32 %v978_v52, %v974_v51  ;;  %v889_v5 = vsel %vm2729_vm5, %v884_v61, %v888_v59  ;;  %v970_v12 = vrot.slane %v969_v4, 4  ;;  %v2348_v21 = vld [vmem:[%s2705_s27 + $0x1c] sm:$0xf]  ;;  %v2349_v31 = vld [vmem:[%s2705_s27 + $0x20] sm:$0x1] }
  0x3b   : > { %v2356_v26 = vld [vmem:[%s2705_s27 + $0x3c] sm:$0xe]  ;;  %v1153_v27 = vsel %vm2707_vm2, %v1151_v17, %v1152_v18  ;;  %v1180_v29 = vrot.slane %v2358_v20, 5  ;;  %v1156_v30 = vrot.slane %v2348_v21, 5  ;;  %v2360_v33 = vld [vmem:[%s2705_s27 + $0x4c] sm:$0xf]  ;;  %v1150_v34 = vsel %vm2707_vm2, %v2368_v23, %v1149_v8 }
  0x3c   : > { %753 = vrot.lane.b32.xlu0 %v2304_v60, %s2634_s30  ;;  %v961_v60 = vsel %vm2729_vm5, %v956_v49, %v960_v47  ;;  %v980_v6 = vrot.slane %v979_v63, 4  ;;  %v975_v22 = vsel %vm2729_vm5, %v970_v12, %v974_v51  ;;  %v231_v36 = vld [vmem:[%s2705_s27 + $0x10] sm:$0xf]  ;;  %v2347_v37 = vld [vmem:[%s2705_s27 + $0x18] sm:$0xe]  ;;  %v1184_v42 = vrot.slane %v2360_v33, 5 }
  0x3d   : > { %248 = vst.msk [vmem:[#allocation2 + $0xc] sm:$0xf] %vm244_vm6, %v231_v36  ;;  %v230_v38 = vld [vmem:[%s2705_s27 + $0xc] sm:$0xf]  ;;  %v1158_v40 = vrot.slane %v1156_v30, 4  ;;  %v2369_v45 = vrot.slane %v2347_v37, 9 }
  0x3e   : > { %771 = vrot.lane.b32.xlu1 %v2313_v3, %s2634_s30  ;;  %v874_v3 = vrot.slane %v873_v56, 4  ;;  %247 = vst.msk [vmem:[#allocation2 + $0x8] sm:$0xf] %vm244_vm6, %v230_v38  ;;  %v2361_v43 = vld [vmem:[%s2705_s27 + $0x50] sm:$0x1]  ;;  %v1186_v50 = vrot.slane %v1184_v42, 4 }
  0x3f   : > { %v2359_v47 = vld [vmem:[%s2705_s27 + $0x48] sm:$0xe]  ;;  %v238_v48 = vld [vmem:[%s2705_s27 + $0x3c] sm:$0xf]  ;;  %v1187_v51 = vrot.slane %v2361_v43, 5  ;;  %v1157_v52 = vsel %vm2707_vm2, %v2369_v45, %v1156_v30 }
  0x40   : > { %769 = vrot.lane.b32.xlu0 %v2312_v10, %s2634_s30  ;;  %v2357_v10 = vld [vmem:[%s2705_s27 + $0x40] sm:$0xf]  ;;  %v879_v11 = vsel %vm2729_vm5, %v874_v3, %v878_v35  ;;  %v2372_v35 = vrot.slane %v2356_v26, 9  ;;  %255 = vst.msk [vmem:[#allocation2 + $0x28] sm:$0xf] %vm244_vm6, %v238_v48 }
  0x41   : > { %v1177_v19 = vrot.slane %v2357_v10, 5  ;;  %v1188_v54 = vsel %vm2707_vm2, %v1186_v50, %v1187_v51  ;;  %v2395_v55 = vld [vmem:[%s2705_s27 + $0x1c] sm:$0xf]  ;;  %v2394_v57 = vld [vmem:[%s2705_s27 + $0x18] sm:$0xf] }
  0x42   : > { %759 = vrot.lane.b32.xlu1 %v2307_v16, %s2634_s30  ;;  %v985_v16 = vsel %vm2729_vm5, %v980_v6, %v984_v7  ;;  %v1403_v58 = vshll.u32 %v2395_v55, 16  ;;  %v1407_v59 = vshrl.u32 %v2395_v55, 16  ;;  %v2407_v61 = vld [vmem:[%s2705_s27 + $0x4c] sm:$0xf]  ;;  %v1394_v63 = vshrl.u32 %v2394_v57, 16 }
  0x43   : > { %v1179_v28 = vrot.slane %v1177_v19, 4  ;;  %v1178_v44 = vsel %vm2707_vm2, %v2372_v35, %v1177_v19  ;;  %v1397_v1 = vshll.u32 %v2394_v57, 16  ;;  %v2378_v62 = vld [vmem:[%s2705_s27 + $0x18] sm:$0xf]  ;;  %v1503_v6 = vshrl.u32 %v2407_v61, 16 }
  0x44   : > { %757 = vrot.lane.b32.xlu0 %v2306_v24, %s2634_s30  ;;  %v237_v24 = vld [vmem:[%s2705_s27 + $0x34] sm:$0xf]  ;;  %v2908_v3 = vrot.slane %v1403_v58, 5  ;;  %v1409_v4 = vrot.slane %v1407_v59, 4  ;;  %v2387_v7 = vld [vmem:[%s2705_s27 + $0x4c] sm:$0xf] }
  0x45   : > { %254 = vst.msk [vmem:[#allocation2 + $0x24] sm:$0xf] %vm244_vm6, %v237_v24  ;;  %v1181_v39 = vsel %vm2707_vm2, %v1179_v28, %v1180_v29  ;;  %v2396_v8 = vld [vmem:[%s2705_s27 + $0x20] sm:$0x1]  ;;  %v1396_v9 = vrot.slane %v1394_v63, 4  ;;  %v1399_v10 = vrot.slane %v1397_v1, 5 }
  0x46   : > { %775 = vrot.lane.b32.xlu1 %v2315_v25, %s2634_s30  ;;  %v229_v25 = vld [vmem:[%s2705_s27 + $0x4] sm:$0xf]  ;;  %v2398_v13 = vld [vmem:[%s2705_s27 + $0x28] sm:$0xf]  ;;  %v1410_v15 = vor.u32 %v1409_v4, %v2908_v3  ;;  %v1505_v18 = vrot.slane %v1503_v6, 4 }
  0x47   : > { %246 = vst.msk [vmem:[#allocation2 + $0x4] sm:$0xf] %vm244_vm6, %v229_v25  ;;  %v2386_v14 = vld [vmem:[%s2705_s27 + $0x48] sm:$0xf]  ;;  %v2397_v19 = vld [vmem:[%s2705_s27 + $0x24] sm:$0xf]  ;;  %v1400_v24 = vor.u32 %v1399_v10, %v1396_v9 }
  0x48   : > { %773 = vrot.lane.b32.xlu0 %v2314_v41, %s2634_s30  ;;  %v1159_v41 = vrot.slane %v2349_v31, 5  ;;  %v2381_v20 = vld [vmem:[%s2705_s27 + $0x28] sm:$0xf]  ;;  %v2408_v21 = vld [vmem:[%s2705_s27 + $0x50] sm:$0x1]  ;;  %v1431_v23 = vshrl.u32 %v2398_v13, 16 }
  0x49   : > { %v2380_v28 = vld [vmem:[%s2705_s27 + $0x24] sm:$0xf]  ;;  %v2389_v29 = vld [vmem:[%s2705_s27 + $0x58] sm:$0xf]  ;;  %v1418_v30 = vshrl.u32 %v2397_v19, 16  ;;  %v1421_v31 = vshll.u32 %v2397_v19, 16 }
  0x4a   : > { %1036 = vrot.lane.b32.xlu1 %v865_v46, %s2635_s5  ;;  %v239_v46 = vld [vmem:[%s2705_s27 + $0x40] sm:$0xf]  ;;  %v1160_v49 = vsel %vm2707_vm2, %v1158_v40, %v1159_v41  ;;  %v1411_v33 = vrot.slane %v1410_v15, 4  ;;  %v1509_v36 = vshll.u32 %v2408_v21, 16  ;;  %v2409_v37 = vld [vmem:[%s2705_s27 + $0x54] sm:$0xf] }
  0x4b   : > { %256 = vst.msk [vmem:[#allocation2 + $0x2c] sm:$0xf] %vm244_vm6, %v239_v46  ;;  %v2399_v38 = vld [vmem:[%s2705_s27 + $0x2c] sm:$0x1]  ;;  %v1433_v40 = vrot.slane %v1431_v23, 4  ;;  %v1401_v43 = vrot.slane %v1400_v24, 4 }
  0x4c   : > { %1034 = vrot.lane.b32.xlu0 %v855_v53, %s2635_s5  ;;  %v2373_v53 = vrot.slane %v2359_v47, 9  ;;  %v2388_v45 = vld [vmem:[%s2705_s27 + $0x54] sm:$0xf]  ;;  %v1420_v46 = vrot.slane %v1418_v30, 4  ;;  %v1423_v47 = vrot.slane %v1421_v31, 5  ;;  %v1514_v48 = vshrl.u32 %v2409_v37, 16 }
  0x4d   : > { %v1511_v51 = vrot.slane %v1509_v36, 5  ;;  %v2411_v55 = vld [vmem:[%s2705_s27 + $0x5c] sm:$0x1]  ;;  %v1406_v58 = vsel %vm2729_vm5, %v1401_v43, %v2908_v3  ;;  %v280_v19 = vld [vmem:[%s2705_s27 + $0x4c] sm:$0xf] }
  0x4e   : > { %1052 = vrot.lane.b32.xlu1 %v961_v60, %s2635_s5  ;;  %v1185_v56 = vsel %vm2707_vm2, %v2373_v53, %v1184_v42  ;;  %v2379_v60 = vld [vmem:[%s2705_s27 + $0x1c] sm:$0xf]  ;;  %v1533_v1 = vshll.u32 %v2411_v55, 16  ;;  %v279_v24 = vld [vmem:[%s2705_s27 + $0x48] sm:$0xf] }
  0x4f   : > { %v2419_v6 = vld [vmem:[%s2705_s27 + $0x1c] sm:$0xf]  ;;  %v2432_v31 = vld [vmem:[%s2705_s27 + $0x50] sm:$0x1]  ;;  %v269_v36 = vld [vmem:[%s2705_s27 + $0x20] sm:$0x1] }
  0x50   : > { %1050 = vrot.lane.b32.xlu0 %v951_v2, %s2635_s5  ;;  %v2406_v2 = vld [vmem:[%s2705_s27 + $0x48] sm:$0xf]  ;;  %v268_v3 = vld [vmem:[%s2705_s27 + $0x1c] sm:$0xf]  ;;  %v1535_v10 = vrot.slane %v1533_v1, 5 }
  0x51   : > { %v1493_v12 = vshll.u32 %v2406_v2, 16  ;;  %v2997_v1 = vld [vmem:[%s2705_s27 + $0x28] sm:$0xf] }
  0x52   : > { %1040 = vrot.lane.b32.xlu1 %v889_v5, %s2635_s5  ;;  %v1499_v5 = vshll.u32 %v2407_v61, 16  ;;  %v1516_v61 = vrot.slane %v1514_v48, 4 }
  0x53   : > { %v1495_v26 = vrot.slane %v1493_v12, 5  ;;  %v1700_v12 = vrot.slane %v2419_v6, 5 }
  0x54   : > { %1038 = vrot.lane.b32.xlu0 %v879_v11, %s2635_s5  ;;  %v1490_v11 = vshrl.u32 %v2406_v2, 16  ;;  %v2917_v17 = vrot.slane %v1499_v5, 5 }
  0x56   : > { %1056 = vrot.lane.b32.xlu1 %v985_v16, %s2635_s5  ;;  %v1413_v16 = vshll.u32 %v2396_v8, 16  ;;  %v1492_v25 = vrot.slane %v1490_v11, 4  ;;  %v1506_v35 = vor.u32 %v1505_v18, %v2917_v17  ;;  %v2420_v11 = vld [vmem:[%s2705_s27 + $0x20] sm:$0x1]  ;;  %v350_v18 = vshrl.u32 %v268_v3, 16 }
  0x58   : > { %1054 = vrot.lane.b32.xlu0 %v975_v22, %s2635_s5  ;;  %v1427_v22 = vshll.u32 %v2398_v13, 16  ;;  %v1507_v53 = vrot.slane %v1506_v35, 4  ;;  %v267_v13 = vld [vmem:[%s2705_s27 + $0x18] sm:$0xf]  ;;  %v352_v35 = vrot.slane %v350_v18, 4 }
  0x59   : > { %v340_v23 = vshll.u32 %v267_v13, 16 }
  0x5a   : > { %1205 = vrot.lane.b32.xlu1 %v1153_v27, %s2636_s6  ;;  %v2410_v27 = vld [vmem:[%s2705_s27 + $0x58] sm:$0xf] }
  0x5b   : > { %v1523_v41 = vshll.u32 %v2410_v27, 16  ;;  %v1527_v42 = vshrl.u32 %v2410_v27, 16  ;;  %v2418_v27 = vld [vmem:[%s2705_s27 + $0x18] sm:$0xe]  ;;  %v342_v43 = vrot.slane %v340_v23, 5 }
  0x5c   : > { %1203 = vrot.lane.b32.xlu0 %v1150_v34, %s2636_s6  ;;  %v1415_v34 = vrot.slane %v1413_v16, 5  ;;  %v346_v16 = vshll.u32 %v268_v3, 16 }
  0x5d   : > { %v1529_v57 = vrot.slane %v1527_v42, 4 }
  0x5e   : > { %1221 = vrot.lane.b32.xlu1 %v1181_v39, %s2636_s6  ;;  %v2930_v39 = vrot.slane %v1427_v22, 5  ;;  %v1416_v50 = vsel %vm2729_vm5, %v1411_v33, %v1415_v34  ;;  %v337_v22 = vshrl.u32 %v267_v13, 16  ;;  %v2972_v34 = vrot.slane %v346_v16, 5  ;;  %v3011_v13 = vld [vmem:[%s2705_s27 + $0x58] sm:$0xf] }
  0x60   : > { %1219 = vrot.lane.b32.xlu0 %v1178_v44, %s2636_s6  ;;  %v1496_v44 = vor.u32 %v1495_v26, %v1492_v25  ;;  %v1702_v25 = vrot.slane %v1700_v12, 4  ;;  %v1703_v26 = vrot.slane %v2420_v11, 5  ;;  %v339_v42 = vrot.slane %v337_v22, 4 }
  0x62   : > { %1209 = vrot.lane.b32.xlu1 %v1160_v49, %s2636_s6  ;;  %v1517_v49 = vshll.u32 %v2409_v37, 16  ;;  %v1497_v59 = vrot.slane %v1496_v44, 4  ;;  %v433_v37 = vshrl.u32 %v279_v24, 16  ;;  %v1731_v44 = vrot.slane %v2432_v31, 5 }
  0x63   : > { %v1704_v48 = vsel %vm2707_vm2, %v1702_v25, %v1703_v26 }
  0x64   : > { %1207 = vrot.lane.b32.xlu0 %v1157_v52, %s2636_s6  ;;  %v1437_v52 = vshll.u32 %v2399_v38, 16  ;;  %v1519_v63 = vrot.slane %v1517_v49, 5  ;;  %v436_v38 = vshll.u32 %v279_v24, 16  ;;  %v232_v24 = vld [vmem:[%s2705_s27 + $0x18] sm:$0xf] }
  0x65   : > { %249 = vst.msk [vmem:[#allocation2 + $0x10] sm:$0xf] %vm244_vm6, %v232_v24  ;;  %v564_v24 = vld [vmem:[%s2705_s27 + $0x4c] sm:$0xf] }
  0x66   : > { %1225 = vrot.lane.b32.xlu1 %v1188_v54, %s2636_s6  ;;  %v1434_v54 = vor.u32 %v1433_v40, %v2930_v39  ;;  %v1439_v4 = vrot.slane %v1437_v52, 5  ;;  %v1520_v9 = vor.u32 %v1519_v63, %v1516_v61  ;;  %v2442_v40 = vrot.slane %v2418_v27, 9 }
  0x67   : > { %v435_v52 = vrot.slane %v433_v37, 4 }
  0x68   : > { %1223 = vrot.lane.b32.xlu0 %v1185_v56, %s2636_s6  ;;  %v2939_v56 = vrot.slane %v1523_v41, 5  ;;  %v1435_v2 = vrot.slane %v1434_v54, 4  ;;  %v1521_v21 = vrot.slane %v1520_v9, 4  ;;  %v2430_v41 = vld [vmem:[%s2705_s27 + $0x48] sm:$0xe]  ;;  %v1701_v54 = vsel %vm2707_vm2, %v2442_v40, %v1700_v12 }
  0x69   : > { %v2446_v55 = vrot.slane %v2430_v41, 9  ;;  %v1707_v9 = vrot.slane %v2997_v1, 5  ;;  %v2421_v12 = vld [vmem:[%s2705_s27 + $0x24] sm:$0xe]  ;;  %v272_v40 = vld [vmem:[%s2705_s27 + $0x2c] sm:$0x1] }
  0x6a   : > { %1306 = vrot.lane.b32.xlu1 %v2379_v60, %s2637_s7  ;;  %v1424_v60 = vor.u32 %v1423_v47, %v1420_v46  ;;  %v1530_v5 = vor.u32 %v1529_v57, %v2939_v56  ;;  %v240_v41 = vld [vmem:[%s2705_s27 + $0x48] sm:$0xf] }
  0x6b   : > { %v1709_v27 = vrot.slane %v1707_v9, 4  ;;  %257 = vst.msk [vmem:[#allocation2 + $0x30] sm:$0xf] %vm244_vm6, %v240_v41  ;;  %v563_v41 = vld [vmem:[%s2705_s27 + $0x48] sm:$0xe] }
  0x6c   : > { %1304 = vrot.lane.b32.xlu0 %v2378_v62, %s2637_s7  ;;  %v1512_v62 = vsel %vm2729_vm5, %v1507_v53, %v1511_v51  ;;  %v1425_v8 = vrot.slane %v1424_v60, 4  ;;  %v1531_v15 = vrot.slane %v1530_v5, 4  ;;  %v356_v51 = vshll.u32 %v269_v36, 16  ;;  %v241_v36 = vld [vmem:[%s2705_s27 + $0x4c] sm:$0xf] }
  0x6d   : > { %v438_v53 = vrot.slane %v436_v38, 5  ;;  %258 = vst.msk [vmem:[#allocation2 + $0x34] sm:$0xf] %vm244_vm6, %v241_v36  ;;  %v565_v36 = vld [vmem:[%s2705_s27 + $0x50] sm:$0x1] }
  0x6e   : > { %1322 = vrot.lane.b32.xlu1 %v2387_v7, %s2637_s7  ;;  %v1502_v7 = vsel %vm2729_vm5, %v1497_v59, %v2917_v17  ;;  %v2431_v17 = vld [vmem:[%s2705_s27 + $0x4c] sm:$0xf]  ;;  %v1536_v30 = vsel %vm2729_vm5, %v1531_v15, %v1535_v10  ;;  %v358_v63 = vrot.slane %v356_v51, 5  ;;  %v270_v10 = vld [vmem:[%s2705_s27 + $0x24] sm:$0xf] }
  0x6f   : > { %v1728_v33 = vrot.slane %v2431_v17, 5  ;;  %v233_v17 = vld [vmem:[%s2705_s27 + $0x1c] sm:$0xf]  ;;  %v361_v22 = vshrl.u32 %v270_v10, 16  ;;  %v364_v23 = vshll.u32 %v270_v10, 16  ;;  %v2585_v10 = vld [vmem:[%s3632_s1] sm:$0xff]  }
  0x70   : > { %1320 = vrot.lane.b32.xlu0 %v2386_v14, %s2637_s7  ;;  %v1440_v14 = vsel %vm2729_vm5, %v1435_v2, %v1439_v4  ;;  %v439_v2 = vor.u32 %v438_v53, %v435_v52  ;;  %v271_v4 = vld [vmem:[%s2705_s27 + $0x28] sm:$0xf]  ;;  %250 = vst.msk [vmem:[#allocation2 + $0x14] sm:$0xf] %vm244_vm6, %v233_v17  ;;  %v380_v52 = vshll.u32 %v272_v40, 16 }
  0x71   : > { %v1730_v49 = vrot.slane %v1728_v33, 4  ;;  %v1729_v5 = vsel %vm2707_vm2, %v2446_v55, %v1728_v33  ;;  %v374_v15 = vshrl.u32 %v271_v4, 16  ;;  %v2582_v55 = vld [vmem:[%s3632_s1 + $0x10] ss:$0 sps:$4 sm:$0x33]  }
  0x72   : > { %1310 = vrot.lane.b32.xlu1 %v2381_v20, %s2637_s7  ;;  %v1430_v20 = vsel %vm2729_vm5, %v1425_v8, %v2930_v39  ;;  %v1526_v39 = vsel %vm2729_vm5, %v1521_v21, %v2939_v56  ;;  %v343_v56 = vor.u32 %v342_v43, %v339_v42  ;;  %v2423_v8 = vld [vmem:[%s2705_s27 + $0x2c] sm:$0x1]  ;;  %v440_v18 = vrot.slane %v439_v2, 4  ;;  %v2433_v42 = vld [vmem:[%s2705_s27 + $0x54] sm:$0xe]  ;;  %2529 = vmatprep.subr.msk.bf16.mxu0 %vm1927_vm9, %v2582_v55 }
  0x73   : > { %v1732_v60 = vsel %vm2707_vm2, %v1730_v49, %v1731_v44  ;;  %v1710_v21 = vrot.slane %v2423_v8, 5  ;;  %v376_v33 = vrot.slane %v374_v15, 4  ;;  %v363_v43 = vrot.slane %v361_v22, 4  ;;  %2530 = vmatprep.subr.msk.bf16.mxu1 %vm1927_vm9, %v2582_v55  ;;  %v235_v15 = vld [vmem:[%s2705_s27 + $0x28] sm:$0xf] }
  0x74   : > { %1308 = vrot.lane.b32.xlu0 %v2380_v28, %s2637_s7  ;;  %v442_v28 = vshll.u32 %v280_v19, 16  ;;  %v344_v6 = vrot.slane %v343_v56, 4  ;;  %v366_v44 = vrot.slane %v364_v23, 5  ;;  %252 = vst.msk [vmem:[#allocation2 + $0x1c] sm:$0xf] %vm244_vm6, %v235_v15 }
  0x75   : > { %v553_v23 = vld [vmem:[%s2705_s27 + $0x20] sm:$0x1] }
  0x76   : > { %1326 = vrot.lane.b32.xlu1 %v2389_v29, %s2637_s7  ;;  %v446_v29 = vshrl.u32 %v280_v19, 16  ;;  %v2982_v46 = vrot.slane %v442_v28, 5  ;;  %v283_v19 = vld [vmem:[%s2705_s27 + $0x58] sm:$0xf]  ;;  %v2435_v28 = vld [vmem:[%s2705_s27 + $0x5c] sm:$0x1] }
  0x78   : > { %1324 = vrot.lane.b32.xlu0 %v2388_v45, %s2637_s7  ;;  %v281_v45 = vld [vmem:[%s2705_s27 + $0x50] sm:$0x1]  ;;  %v448_v47 = vrot.slane %v446_v29, 4  ;;  %v1735_v29 = vrot.slane %v3011_v13, 5  ;;  %v445_v38 = vsel %vm2729_vm5, %v440_v18, %v2982_v46 }
  0x79   : > { %v452_v57 = vshll.u32 %v281_v45, 16 }
  0x7a   : > { %1587 = vrot.lane.b32.xlu1 %v1416_v50, %s2638_s8  ;;  %v353_v50 = vor.u32 %v352_v35, %v2972_v34  ;;  %v470_v35 = vshrl.u32 %v283_v19, 16  ;;  %v1737_v49 = vrot.slane %v1735_v29, 4 }
  0x7b   : > { %v454_v3 = vrot.slane %v452_v57, 5 }
  0x7c   : > { %1585 = vrot.lane.b32.xlu0 %v1406_v58, %s2638_s8  ;;  %v449_v58 = vor.u32 %v448_v47, %v2982_v46  ;;  %v354_v61 = vrot.slane %v353_v50, 4  ;;  %v1711_v46 = vsel %vm2707_vm2, %v1709_v27, %v1710_v21  ;;  %v1738_v50 = vrot.slane %v2435_v28, 5  ;;  %v243_v21 = vld [vmem:[%s2705_s27 + $0x58] sm:$0xf] }
  0x7d   : > { %260 = vst.msk [vmem:[#allocation2 + $0x3c] sm:$0xf] %vm244_vm6, %v243_v21  ;;  %v2338_v21 = vld [vmem:[%s2705_s27 + $0x54] sm:$0xf] }
  0x7e   : > { %1603 = vrot.lane.b32.xlu1 %v1512_v62, %s2638_s8  ;;  %v359_v11 = vsel %vm2729_vm5, %v354_v61, %v358_v63  ;;  %v2584_v61 = vld [vmem:[%s3632_s1 + $0x8] sm:$0xff]   ;;  %v367_v63 = vor.u32 %v366_v44, %v363_v43  ;;  %v643_v44 = vrot.slane %v565_v36, 5  ;;  %v2316_v36 = vld [vmem:[%s2705_s27 + $0x54] sm:$0xf] }
  0x80   : > { %1601 = vrot.lane.b32.xlu0 %v1502_v7, %s2638_s8  ;;  %v450_v7 = vrot.slane %v449_v58, 4  ;;  %v2447_v58 = vrot.slane %v2433_v42, 9 }
  0x82   : > { %1591 = vrot.lane.b32.xlu1 %v1440_v14, %s2638_s8  ;;  %v370_v14 = vshll.u32 %v271_v4, 16  ;;  %v455_v26 = vsel %vm2729_vm5, %v450_v7, %v454_v3  ;;  %v1739_v4 = vsel %vm2707_vm2, %v1737_v49, %v1738_v50  ;;  %v2300_v50 = vrot.slane %v563_v41, 9 }
  0x84   : > { %1589 = vrot.lane.b32.xlu0 %v1430_v20, %s2638_s8  ;;  %v349_v20 = vsel %vm2729_vm5, %v344_v6, %v2972_v34  ;;  %v3032_v31 = vrot.slane %v370_v14, 5  ;;  %v466_v34 = vshll.u32 %v283_v19, 16  ;;  %v382_v6 = vrot.slane %v380_v52, 5  ;;  %v554_v52 = vld [vmem:[%s2705_s27 + $0x24] sm:$0xe] }
  0x86   : > { %1607 = vrot.lane.b32.xlu1 %v1536_v30, %s2638_s8  ;;  %v282_v30 = vld [vmem:[%s2705_s27 + $0x54] sm:$0xf]  ;;  %v377_v51 = vor.u32 %v376_v33, %v3032_v31  ;;  %v3053_v53 = vrot.slane %v466_v34, 5  ;;  %v615_v34 = vrot.slane %v553_v23, 5 }
  0x87   : > { %v457_v45 = vshrl.u32 %v282_v30, 16  ;;  %v460_v47 = vshll.u32 %v282_v30, 16 }
  0x88   : > { %1605 = vrot.lane.b32.xlu0 %v1526_v39, %s2638_s8  ;;  %v2443_v39 = vrot.slane %v2421_v12, 9  ;;  %v368_v12 = vrot.slane %v367_v63, 4 }
  0x89   : > { %v653_v62 = vpop.permute.xlu0 %652  ;;  %v462_v2 = vrot.slane %v460_v47, 5 }
  0x8a   : > { %1756 = vrot.lane.b32.xlu1 %v1704_v48, %s2639_s9  ;;  %v1708_v57 = vsel %vm2707_vm2, %v2443_v39, %v1707_v9  ;;  %v3077_v9 = vld [vmem:[%s2705_s27 + $0x1c] sm:$0xf] }
  0x8b   : > { %v2992_v59 = vpop.permute.xlu1 %654 }
  0x8c   : > { %1754 = vrot.lane.b32.xlu0 %v1701_v54, %s2639_s9  ;;  %v472_v54 = vrot.slane %v470_v35, 4 }
  0x8e   : > { %1772 = vrot.lane.b32.xlu1 %v1732_v60, %s2639_s9  ;;  %v284_v60 = vld [vmem:[%s2705_s27 + $0x5c] sm:$0x1]  ;;  %v473_v3 = vor.u32 %v472_v54, %v3053_v53 }
  0x8f   : > { %v476_v7 = vshll.u32 %v284_v60, 16 }
  0x90   : > { %1770 = vrot.lane.b32.xlu0 %v1729_v5, %s2639_s9  ;;  %v497_v16 = vpop.permute.xlu1 %496  ;;  %v378_v5 = vrot.slane %v377_v51, 4  ;;  %v474_v19 = vrot.slane %v473_v3, 4 }
  0x91   : > { %537 = vst.msk [vmem:[#allocation2 + $0x20] sm:$0xf] %vm528_vm7, %v497_v16  ;;  %v234_v16 = vld [vmem:[%s2705_s27 + $0x24] sm:$0xf]  ;;  %v478_v17 = vrot.slane %v476_v7, 5 }
  0x92   : > { %v481_v25 = vpop.permute.xlu0 %480  ;;  %490 = vrot.lane.b32.xlu1 %v359_v11, %s2633_s29  ;;  %v1736_v11 = vsel %vm2707_vm2, %v2447_v58, %v1735_v29  ;;  %251 = vst.msk [vmem:[#allocation2 + $0x18] sm:$0xf] %vm244_vm6, %v234_v16  ;;  %v383_v13 = vsel %vm2729_vm5, %v378_v5, %v382_v6  ;;  %v551_v29 = vld [vmem:[%s2705_s27 + $0x18] sm:$0xe]  ;;  %v568_v58 = vld [vmem:[%s2705_s27 + $0x5c] sm:$0x1] }
  0x93   : > { %529 = vst.msk [vmem:[#allocation2] sm:$0xf] %vm528_vm7, %v481_v25  ;;  %v242_v25 = vld [vmem:[%s2705_s27 + $0x54] sm:$0xf]  ;;  %v479_v30 = vsel %vm2729_vm5, %v474_v19, %v478_v17  ;;  %v2296_v39 = vrot.slane %v551_v29, 9 }
  0x94   : > { %488 = vrot.lane.b32.xlu0 %v349_v20, %s2633_s29  ;;  %v499_v37 = vpop.permute.xlu1 %498  ;;  %701 = vst.msk [vmem:[#allocation2] sm:$0xf] %vm700_vm8, %v653_v62  ;;  %v459_v62 = vrot.slane %v457_v45, 4  ;;  %v612_v20 = vrot.slane %v3077_v9, 5  ;;  %v2309_v16 = vld [vmem:[%s2705_s27 + $0x28] sm:$0xf] }
  0x95   : > { %538 = vst.msk [vmem:[#allocation2 + $0x24] sm:$0xf] %vm528_vm7, %v499_v37  ;;  %v555_v37 = vld [vmem:[%s2705_s27 + $0x28] sm:$0xf] }
  0x96   : > { %v483_v48 = vpop.permute.xlu0 %482  ;;  %506 = vrot.lane.b32.xlu1 %v455_v26, %s2633_s29  ;;  %v463_v14 = vor.u32 %v462_v2, %v459_v62  ;;  %v373_v26 = vsel %vm2729_vm5, %v368_v12, %v3032_v31  ;;  %259 = vst.msk [vmem:[#allocation2 + $0x38] sm:$0xf] %vm244_vm6, %v242_v25  ;;  %v614_v33 = vrot.slane %v612_v20, 4  ;;  %v640_v31 = vrot.slane %v564_v24, 5  ;;  %v566_v62 = vld [vmem:[%s2705_s27 + $0x54] sm:$0xe] }
  0x97   : > { %530 = vst.msk [vmem:[#allocation2 + $0x4] sm:$0xf] %vm528_vm7, %v483_v48  ;;  %v619_v45 = vrot.slane %v555_v37, 5  ;;  %v556_v48 = vld [vmem:[%s2705_s27 + $0x2c] sm:$0x1]  ;;  %v613_v49 = vsel %vm2707_vm2, %v2296_v39, %v612_v20  ;;  %v2301_v6 = vrot.slane %v566_v62, 9 }
  0x98   : > { %504 = vrot.lane.b32.xlu0 %v445_v38, %s2633_s29  ;;  %v487_v56 = vpop.permute.xlu1 %486  ;;  %702 = vst.msk [vmem:[#allocation2 + $0x4] sm:$0xf] %vm700_vm8, %v2992_v59  ;;  %v1929_v59 = vsel %vm1927_vm9, %v2582_v55, 0  ;;  %v464_v27 = vrot.slane %v463_v14, 4  ;;  %v616_v42 = vsel %vm2707_vm2, %v614_v33, %v615_v34  ;;  %v642_v43 = vrot.slane %v640_v31, 4 }
  0x99   : > { %532 = vst.msk [vmem:[#allocation2 + $0xc] sm:$0xf] %vm528_vm7, %v487_v56  ;;  %2502 = vmatpush3.bf16.msra.mxu0 %v1929_v59  ;;  %2526 = vmatpush3.bf16.msra.mxu1 %v1929_v59  ;;  %v621_v54 = vrot.slane %v619_v45, 4  ;;  %v622_v55 = vrot.slane %v556_v48, 5  ;;  %v641_v60 = vsel %vm2707_vm2, %v2300_v50, %v640_v31  ;;  %v2308_v20 = vld [vmem:[%s2705_s27 + $0x24] sm:$0xf] }
  0x9a   : > { %v485_v1 = vpop.permute.xlu0 %484  ;;  %1760 = vrot.lane.b32.xlu1 %v1711_v46, %s2639_s9  ;;  %2503 = vmatprep.subr.bf16.mxu0 %v2584_v61  ;;  %v469_v38 = vsel %vm2729_vm5, %v464_v27, %v3053_v53  ;;  %v567_v46 = vld [vmem:[%s2705_s27 + $0x58] sm:$0xf]  ;;  %v644_v53 = vsel %vm2707_vm2, %v642_v43, %v643_v44  ;;  %v987_v34 = vshrl.u32 %v2338_v21, 16  ;;  %v990_v31 = vshll.u32 %v2338_v21, 16  ;;  %v2311_v43 = vld [vmem:[%s2705_s27 + $0x34] sm:$0xf] }
  0x9b   : > { %531 = vst.msk [vmem:[#allocation2 + $0x8] sm:$0xf] %vm528_vm7, %v485_v1  ;;  %2524 = vmatprep.subr.bf16.mxu1 %v2584_v61  ;;  %v647_v56 = vrot.slane %v567_v46, 5  ;;  %v623_v2 = vsel %vm2707_vm2, %v621_v54, %v622_v55  ;;  %v2317_v27 = vld [vmem:[%s2705_s27 + $0x58] sm:$0xf] }
  0x9c   : > { %1758 = vrot.lane.b32.xlu0 %v1708_v57, %s2639_s9  ;;  %v503_v8 = vpop.permute.xlu1 %502  ;;  %v2340_v44 = vld [vmem:[%s2705_s27 + $0x5c] sm:$0x1]  ;;  %v992_v50 = vrot.slane %v990_v31, 5  ;;  %v2331_v62 = vld [vmem:[%s2705_s27 + $0x38] sm:$0x1] }
  0x9d   : > { %540 = vst.msk [vmem:[#allocation2 + $0x2c] sm:$0xf] %vm528_vm7, %v503_v8  ;;  %2504 = vmatpush3.bf16.msra.mxu0 %v2584_v61  ;;  %2527 = vmatpush3.bf16.msra.mxu1 %v2584_v61  ;;  %v2297_v61 = vrot.slane %v554_v52, 9  ;;  %v649_v1 = vrot.slane %v647_v56, 4  ;;  %v2327_v8 = vld [vmem:[%s2705_s27 + $0x28] sm:$0xf] }
  0x9e   : > { %v501_v18 = vpop.permute.xlu0 %500  ;;  %1776 = vrot.lane.b32.xlu1 %v1739_v4, %s2639_s9  ;;  %2505 = vmatprep.subr.bf16.mxu0 %v2585_v10  ;;  %v650_v4 = vrot.slane %v568_v58, 5  ;;  %v900_v14 = vshll.u32 %v2327_v8, 16  ;;  %v904_v15 = vshrl.u32 %v2327_v8, 16  ;;  %v2310_v52 = vld [vmem:[%s2705_s27 + $0x30] sm:$0xf] }
  0x9f   : > { %539 = vst.msk [vmem:[#allocation2 + $0x28] sm:$0xf] %vm528_vm7, %v501_v18  ;;  %2525 = vmatprep.subr.bf16.mxu1 %v2585_v10  ;;  %v620_v5 = vsel %vm2707_vm2, %v2297_v61, %v619_v45  ;;  %v2339_v18 = vld [vmem:[%s2705_s27 + $0x58] sm:$0xf]  ;;  %v1006_v61 = vshll.u32 %v2340_v44, 16 }
  0xa0   : > { %1774 = vrot.lane.b32.xlu0 %v1736_v11, %s2639_s9  ;;  %v671_v22 = vpop.permute.xlu1 %670  ;;  %v651_v7 = vsel %vm2707_vm2, %v649_v1, %v650_v4  ;;  %v2326_v11 = vld [vmem:[%s2705_s27 + $0x24] sm:$0xf]  ;;  %v3168_v23 = vrot.slane %v900_v14, 5  ;;  %v906_v24 = vrot.slane %v904_v15, 4  ;;  %v996_v25 = vshll.u32 %v2339_v18, 16 }
  0xa1   : > { %710 = vst.msk [vmem:[#allocation2 + $0x24] sm:$0xf] %vm700_vm8, %v671_v22  ;;  %2506 = vmatpush3.bf16.msra.mxu0 %v2585_v10  ;;  %2528 = vmatpush3.bf16.msra.mxu1 %v2585_v10  ;;  %v648_v10 = vsel %vm2707_vm2, %v2301_v6, %v647_v56  ;;  %v891_v19 = vshrl.u32 %v2326_v11, 16  ;;  %v894_v17 = vshll.u32 %v2326_v11, 16  ;;  %v1008_v15 = vrot.slane %v1006_v61, 5 }
  0xa2   : > { %v669_v28 = vpop.permute.xlu0 %668  ;;  %494 = vrot.lane.b32.xlu1 %v383_v13, %s2633_s29 }
  0xa3   : > { %709 = vst.msk [vmem:[#allocation2 + $0x20] sm:$0xf] %vm700_vm8, %v669_v28  ;;  %v2328_v28 = vld [vmem:[%s2705_s27 + $0x2c] sm:$0x1]  ;;  %v896_v33 = vrot.slane %v894_v17, 5 }
  0xa4   : > { %492 = vrot.lane.b32.xlu0 %v373_v26, %s2633_s29  ;;  %v659_v35 = vpop.permute.xlu1 %658  ;;  %v1000_v26 = vshrl.u32 %v2339_v18, 16  ;;  %v910_v39 = vshll.u32 %v2328_v28, 16 }
  0xa5   : > { %704 = vst.msk [vmem:[#allocation2 + $0xc] sm:$0xf] %vm700_vm8, %v659_v35  ;;  %v2330_v35 = vld [vmem:[%s2705_s27 + $0x34] sm:$0xf] }
  0xa6   : > { %v657_v40 = vpop.permute.xlu0 %656  ;;  %510 = vrot.lane.b32.xlu1 %v479_v30, %s2633_s29  ;;  %v893_v30 = vrot.slane %v891_v19, 4  ;;  %v1002_v41 = vrot.slane %v1000_v26, 4  ;;  %v924_v45 = vshll.u32 %v2330_v35, 16  ;;  %v912_v58 = vrot.slane %v910_v39, 5 }
  0xa7   : > { %703 = vst.msk [vmem:[#allocation2 + $0x8] sm:$0xf] %vm700_vm8, %v657_v40  ;;  %v3179_v40 = vrot.slane %v996_v25, 5 }
  0xa8   : > { %508 = vrot.lane.b32.xlu0 %v469_v38, %s2633_s29  ;;  %v675_v47 = vpop.permute.xlu1 %674  ;;  %v907_v38 = vor.u32 %v906_v24, %v3168_v23  ;;  %v897_v46 = vor.u32 %v896_v33, %v893_v30 }
  0xa9   : > { %712 = vst.msk [vmem:[#allocation2 + $0x2c] sm:$0xf] %vm700_vm8, %v675_v47  ;;  %v928_v47 = vshrl.u32 %v2330_v35, 16  ;;  %v2351_v35 = vld [vmem:[%s2705_s27 + $0x28] sm:$0xf] }
  0xaa   : > { %v673_v51 = vpop.permute.xlu0 %672  ;;  %662 = vrot.lane.b32.xlu1 %v616_v42, %s2632_s28  ;;  %v2329_v42 = vld [vmem:[%s2705_s27 + $0x30] sm:$0xf]  ;;  %v898_v6 = vrot.slane %v897_v46, 4  ;;  %v1163_v44 = vrot.slane %v2351_v35, 5 }
  0xab   : > { %711 = vst.msk [vmem:[#allocation2 + $0x28] sm:$0xf] %vm700_vm8, %v673_v51  ;;  %v2342_v51 = vld [vmem:[%s2705_s27 + $0x64] sm:$0xf]  ;;  %v915_v54 = vshrl.u32 %v2329_v42, 16  ;;  %v918_v55 = vshll.u32 %v2329_v42, 16 }
  0xac   : > { %660 = vrot.lane.b32.xlu0 %v613_v49, %s2632_s28  ;;  %v756_v57 = vpop.permute.xlu1 %755  ;;  %v989_v49 = vrot.slane %v987_v34, 4  ;;  %v930_v1 = vrot.slane %v928_v47, 4  ;;  %v1020_v4 = vshll.u32 %v2342_v51, 16  ;;  %v903_v21 = vsel %vm2729_vm5, %v898_v6, %v3168_v23  ;;  %v2352_v47 = vld [vmem:[%s2705_s27 + $0x2c] sm:$0x1] }
  0xad   : > { %803 = vst.msk [vmem:[#allocation2 + $0x4] sm:$0xf] %vm801_vm10, %v756_v57  ;;  %v908_v57 = vrot.slane %v907_v38, 4  ;;  %v917_v8 = vrot.slane %v915_v54, 4  ;;  %v2366_v6 = vld [vmem:[%s2705_s27 + $0x64] sm:$0xf] }
  0xae   : > { %v754_v63 = vpop.permute.xlu0 %753  ;;  %678 = vrot.lane.b32.xlu1 %v644_v53, %s2632_s28  ;;  %v2319_v53 = vld [vmem:[%s2705_s27 + $0x64] sm:$0xf]  ;;  %v3205_v19 = vrot.slane %v1020_v4, 5 }
  0xaf   : > { %802 = vst.msk [vmem:[#allocation2] sm:$0xf] %vm801_vm10, %v754_v63  ;;  %v2341_v63 = vld [vmem:[%s2705_s27 + $0x60] sm:$0xf]  ;;  %v913_v14 = vsel %vm2729_vm5, %v908_v57, %v912_v58  ;;  %v2354_v57 = vld [vmem:[%s2705_s27 + $0x34] sm:$0xf] }
  0xb0   : > { %676 = vrot.lane.b32.xlu0 %v641_v60, %s2632_s28  ;;  %v772_v59 = vpop.permute.xlu1 %771  ;;  %v1003_v60 = vor.u32 %v1002_v41, %v3179_v40  ;;  %v1014_v11 = vshll.u32 %v2341_v63, 16  ;;  %v1170_v4 = vrot.slane %v2354_v57, 5 }
  0xb1   : > { %811 = vst.msk [vmem:[#allocation2 + $0x24] sm:$0xf] %vm801_vm10, %v772_v59  ;;  %v1024_v59 = vshrl.u32 %v2342_v51, 16 }
  0xb2   : > { %v770_v3 = vpop.permute.xlu0 %769  ;;  %666 = vrot.lane.b32.xlu1 %v623_v2, %s2632_s28  ;;  %v3195_v2 = vrot.slane %v924_v45, 5  ;;  %v1004_v18 = vrot.slane %v1003_v60, 4 }
  0xb3   : > { %810 = vst.msk [vmem:[#allocation2 + $0x20] sm:$0xf] %vm801_vm10, %v770_v3  ;;  %v993_v3 = vor.u32 %v992_v50, %v989_v49  ;;  %v1026_v17 = vrot.slane %v1024_v59, 4  ;;  %v2350_v50 = vld [vmem:[%s2705_s27 + $0x24] sm:$0xe] }
  0xb4   : > { %664 = vrot.lane.b32.xlu0 %v620_v5, %s2632_s28  ;;  %v760_v9 = vpop.permute.xlu1 %759  ;;  %v1009_v30 = vsel %vm2729_vm5, %v1004_v18, %v1008_v15  ;;  %v2370_v60 = vrot.slane %v2350_v50, 9 }
  0xb5   : > { %805 = vst.msk [vmem:[#allocation2 + $0xc] sm:$0xf] %vm801_vm10, %v760_v9  ;;  %v920_v9 = vrot.slane %v918_v55, 5  ;;  %v994_v24 = vrot.slane %v993_v3, 4  ;;  %v1027_v23 = vor.u32 %v1026_v17, %v3205_v19  ;;  %v2365_v17 = vld [vmem:[%s2705_s27 + $0x60] sm:$0xe] }
  0xb6   : > { %v758_v12 = vpop.permute.xlu0 %757  ;;  %682 = vrot.lane.b32.xlu1 %v651_v7, %s2632_s28  ;;  %v2318_v7 = vld [vmem:[%s2705_s27 + $0x60] sm:$0xf]  ;;  %v1164_v3 = vsel %vm2707_vm2, %v2370_v60, %v1163_v44 }
  0xb7   : > { %804 = vst.msk [vmem:[#allocation2 + $0x8] sm:$0xf] %vm801_vm10, %v758_v12  ;;  %v921_v25 = vor.u32 %v920_v9, %v917_v8  ;;  %v1028_v42 = vrot.slane %v1027_v23, 4  ;;  %v2353_v9 = vld [vmem:[%s2705_s27 + $0x30] sm:$0xe] }
  0xb8   : > { %680 = vrot.lane.b32.xlu0 %v648_v10, %s2632_s28  ;;  %v776_v13 = vpop.permute.xlu1 %775  ;;  %v1011_v10 = vshrl.u32 %v2341_v63, 16  ;;  %v2362_v63 = vld [vmem:[%s2705_s27 + $0x54] sm:$0xe]  ;;  %v2400_v23 = vld [vmem:[%s2705_s27 + $0x30] sm:$0xf]  ;;  %s219_s28 = sadd.s32 %s2289_s25, %s2288_s24 }
  0xb9   : > { %813 = vst.msk [vmem:[#allocation2 + $0x2c] sm:$0xf] %vm801_vm10, %v776_v13  ;;  %v931_v13 = vor.u32 %v930_v1, %v3195_v2 }
  0xba   : > { %v774_v22 = vpop.permute.xlu0 %773  ;;  %763 = vrot.lane.b32.xlu1 %v2309_v16, %s2634_s30  ;;  %v934_v16 = vshll.u32 %v2331_v62, 16  ;;  %v1013_v26 = vrot.slane %v1011_v10, 4 }
  0xbb   : > { %812 = vst.msk [vmem:[#allocation2 + $0x28] sm:$0xf] %vm801_vm10, %v774_v22  ;;  %v2343_v22 = vld [vmem:[%s2705_s27 + $0x68] sm:$0x1]  ;;  %v932_v33 = vrot.slane %v931_v13, 4  ;;  %v2371_v13 = vrot.slane %v2353_v9, 9 }
  0xbc   : > { %761 = vrot.lane.b32.xlu0 %v2308_v20, %s2634_s30  ;;  %v1037_v29 = vpop.permute.xlu1 %1036  ;;  %v1030_v34 = vshll.u32 %v2343_v22, 16  ;;  %v2384_v9 = vld [vmem:[%s2705_s27 + $0x3c] sm:$0xf] }
  0xbd   : > { %1084 = vst.msk [vmem:[#allocation2 + $0x4] sm:$0xf] %vm1082_vm11, %v1037_v29  ;;  %v936_v29 = vrot.slane %v934_v16, 5  ;;  %v2367_v16 = vld [vmem:[%s2705_s27 + $0x68] sm:$0x1] }
  0xbe   : > { %v1035_v37 = vpop.permute.xlu0 %1034  ;;  %779 = vrot.lane.b32.xlu1 %v2317_v27, %s2634_s30  ;;  %v1016_v27 = vrot.slane %v1014_v11, 5  ;;  %v1172_v11 = vrot.slane %v1170_v4, 4  ;;  %v1201_v22 = vrot.slane %v2367_v16, 5 }
  0xbf   : > { %1083 = vst.msk [vmem:[#allocation2] sm:$0xf] %vm1082_vm11, %v1035_v37  ;;  %v922_v37 = vrot.slane %v921_v25, 4  ;;  %v937_v41 = vsel %vm2729_vm5, %v932_v33, %v936_v29  ;;  %v1171_v25 = vsel %vm2707_vm2, %v2371_v13, %v1170_v4  ;;  %v2401_v29 = vld [vmem:[%s2705_s27 + $0x34] sm:$0xf] }
  0xc0   : > { %777 = vrot.lane.b32.xlu0 %v2316_v36, %s2634_s30  ;;  %v1053_v48 = vpop.permute.xlu1 %1052  ;;  %v999_v36 = vsel %vm2729_vm5, %v994_v24, %v3179_v40  ;;  %v1017_v38 = vor.u32 %v1016_v27, %v1013_v26  ;;  %v2363_v40 = vld [vmem:[%s2705_s27 + $0x58] sm:$0xf]  ;;  %v2375_v26 = vrot.slane %v2365_v17, 9  ;;  %v1455_v35 = vshrl.u32 %v2401_v29, 16  ;;  %v2405_v17 = vld [vmem:[%s2705_s27 + $0x44] sm:$0x1] }
  0xc1   : > { %1092 = vst.msk [vmem:[#allocation2 + $0x24] sm:$0xf] %vm1082_vm11, %v1053_v48  ;;  %v927_v48 = vsel %vm2729_vm5, %v922_v37, %v3195_v2  ;;  %v1191_v54 = vrot.slane %v2363_v40, 5  ;;  %v2413_v37 = vld [vmem:[%s2705_s27 + $0x64] sm:$0xf] }
  0xc2   : > { %v1051_v56 = vpop.permute.xlu0 %1050  ;;  %767 = vrot.lane.b32.xlu1 %v2311_v43, %s2634_s30  ;;  %v1032_v43 = vrot.slane %v1030_v34, 5  ;;  %v1018_v46 = vrot.slane %v1017_v38, 4  ;;  %v1547_v40 = vshll.u32 %v2413_v37, 16 }
  0xc3   : > { %1091 = vst.msk [vmem:[#allocation2 + $0x20] sm:$0xf] %vm1082_vm11, %v1051_v56  ;;  %v2364_v56 = vld [vmem:[%s2705_s27 + $0x5c] sm:$0x1]  ;;  %v1193_v2 = vrot.slane %v1191_v54, 4 }
  0xc4   : > { %765 = vrot.lane.b32.xlu0 %v2310_v52, %s2634_s30  ;;  %v1041_v5 = vpop.permute.xlu1 %1040  ;;  %v1033_v51 = vsel %vm2729_vm5, %v1028_v42, %v1032_v43  ;;  %v1165_v52 = vrot.slane %v1163_v44, 4  ;;  %v1023_v58 = vsel %vm2729_vm5, %v1018_v46, %v3205_v19  ;;  %v1194_v1 = vrot.slane %v2364_v56, 5  ;;  %v2382_v42 = vld [vmem:[%s2705_s27 + $0x30] sm:$0xf]  ;;  %v2412_v43 = vld [vmem:[%s2705_s27 + $0x60] sm:$0xf] }
  0xc5   : > { %1086 = vst.msk [vmem:[#allocation2 + $0xc] sm:$0xf] %vm1082_vm11, %v1041_v5  ;;  %v2355_v5 = vld [vmem:[%s2705_s27 + $0x38] sm:$0x1]  ;;  %v2391_v46 = vld [vmem:[%s2705_s27 + $0x64] sm:$0xf] }
  0xc6   : > { %v1039_v12 = vpop.permute.xlu0 %1038  ;;  %783 = vrot.lane.b32.xlu1 %v2319_v53, %s2634_s30  ;;  %v1166_v53 = vrot.slane %v2352_v47, 5  ;;  %v1195_v10 = vsel %vm2707_vm2, %v1193_v2, %v1194_v1  ;;  %v1457_v47 = vrot.slane %v1455_v35, 4  ;;  %v2390_v56 = vld [vmem:[%s2705_s27 + $0x60] sm:$0xf]  ;;  %v2414_v1 = vld [vmem:[%s2705_s27 + $0x68] sm:$0x1] }
  0xc7   : > { %1085 = vst.msk [vmem:[#allocation2 + $0x8] sm:$0xf] %vm1082_vm11, %v1039_v12  ;;  %v1173_v12 = vrot.slane %v2355_v5, 5  ;;  %v2385_v2 = vld [vmem:[%s2705_s27 + $0x40] sm:$0xf]  ;;  %v1557_v13 = vshll.u32 %v2414_v1, 16 }
  0xc8   : > { %781 = vrot.lane.b32.xlu0 %v2318_v7, %s2634_s30  ;;  %v1057_v20 = vpop.permute.xlu1 %1056  ;;  %v1167_v62 = vsel %vm2707_vm2, %v1165_v52, %v1166_v53  ;;  %v2374_v7 = vrot.slane %v2362_v63, 9  ;;  %v1538_v53 = vshrl.u32 %v2412_v43, 16 }
  0xc9   : > { %1094 = vst.msk [vmem:[#allocation2 + $0x2c] sm:$0xf] %vm1082_vm11, %v1057_v20  ;;  %v1174_v20 = vsel %vm2707_vm2, %v1172_v11, %v1173_v12  ;;  %v1559_v35 = vrot.slane %v1557_v13, 5 }
  0xca   : > { %v1055_v28 = vpop.permute.xlu0 %1054  ;;  %1044 = vrot.lane.b32.xlu1 %v913_v14, %s2635_s5  ;;  %v1198_v14 = vrot.slane %v2366_v6, 5  ;;  %v1192_v18 = vsel %vm2707_vm2, %v2374_v7, %v1191_v54  ;;  %v1541_v54 = vshll.u32 %v2412_v43, 16 }
  0xcb   : > { %1093 = vst.msk [vmem:[#allocation2 + $0x28] sm:$0xf] %vm1082_vm11, %v1055_v28 }
  0xcc   : > { %1042 = vrot.lane.b32.xlu0 %v903_v21, %s2635_s5  ;;  %v1206_v31 = vpop.permute.xlu1 %1205  ;;  %v1200_v21 = vrot.slane %v1198_v14, 4  ;;  %v1199_v33 = vsel %vm2707_vm2, %v2375_v26, %v1198_v14  ;;  %v1543_v7 = vrot.slane %v1541_v54, 5 }
  0xcd   : > { %1253 = vst.msk [vmem:[#allocation2 + $0x4] sm:$0xf] %vm1251_vm12, %v1206_v31  ;;  %v1451_v31 = vshll.u32 %v2401_v29, 16 }
  0xce   : > { %v1204_v39 = vpop.permute.xlu0 %1203  ;;  %1060 = vrot.lane.b32.xlu1 %v1009_v30, %s2635_s5  ;;  %v1202_v28 = vsel %vm2707_vm2, %v1200_v21, %v1201_v22 }
  0xcf   : > { %1252 = vst.msk [vmem:[#allocation2] sm:$0xf] %vm1251_vm12, %v1204_v39  ;;  %v1442_v39 = vshrl.u32 %v2400_v23, 16 }
  0xd0   : > { %1058 = vrot.lane.b32.xlu0 %v999_v36, %s2635_s5  ;;  %v1222_v45 = vpop.permute.xlu1 %1221  ;;  %v2383_v36 = vld [vmem:[%s2705_s27 + $0x34] sm:$0xf] }
  0xd1   : > { %1261 = vst.msk [vmem:[#allocation2 + $0x24] sm:$0xf] %vm1251_vm12, %v1222_v45  ;;  %v3296_v45 = vrot.slane %v1451_v31, 5 }
  0xd2   : > { %v1220_v49 = vpop.permute.xlu0 %1219  ;;  %1048 = vrot.lane.b32.xlu1 %v937_v41, %s2635_s5  ;;  %v1445_v41 = vshll.u32 %v2400_v23, 16 }
  0xd3   : > { %1260 = vst.msk [vmem:[#allocation2 + $0x20] sm:$0xf] %vm1251_vm12, %v1220_v49  ;;  %v2402_v49 = vld [vmem:[%s2705_s27 + $0x38] sm:$0x1] }
  0xd4   : > { %1046 = vrot.lane.b32.xlu0 %v927_v48, %s2635_s5  ;;  %v1210_v55 = vpop.permute.xlu1 %1209  ;;  %v1551_v48 = vshrl.u32 %v2413_v37, 16  ;;  %v1447_v52 = vrot.slane %v1445_v41, 5  ;;  %v1461_v60 = vshll.u32 %v2402_v49, 16 }
  0xd5   : > { %1255 = vst.msk [vmem:[#allocation2 + $0xc] sm:$0xf] %vm1251_vm12, %v1210_v55  ;;  %v2404_v55 = vld [vmem:[%s2705_s27 + $0x40] sm:$0xf] }
  0xd6   : > { %v1208_v61 = vpop.permute.xlu0 %1207  ;;  %1064 = vrot.lane.b32.xlu1 %v1033_v51, %s2635_s5  ;;  %v1444_v51 = vrot.slane %v1442_v39, 4  ;;  %v1553_v63 = vrot.slane %v1551_v48, 4  ;;  %v1475_v4 = vshll.u32 %v2404_v55, 16  ;;  %v1463_v16 = vrot.slane %v1461_v60, 5 }
  0xd7   : > { %1254 = vst.msk [vmem:[#allocation2 + $0x8] sm:$0xf] %vm1251_vm12, %v1208_v61  ;;  %v3307_v61 = vrot.slane %v1547_v40, 5 }
  0xd8   : > { %1062 = vrot.lane.b32.xlu0 %v1023_v58, %s2635_s5  ;;  %v1226_v59 = vpop.permute.xlu1 %1225  ;;  %v1458_v58 = vor.u32 %v1457_v47, %v3296_v45  ;;  %v1448_v6 = vor.u32 %v1447_v52, %v1444_v51  ;;  %s2290_s5 = sshll.u32 %s219_s28, 3 }
  0xd9   : > { %1263 = vst.msk [vmem:[#allocation2 + $0x2c] sm:$0xf] %vm1251_vm12, %v1226_v59  ;;  %v1479_v59 = vshrl.u32 %v2404_v55, 16  ;;  %v2425_v55 = vld [vmem:[%s2705_s27 + $0x34] sm:$0xf] }
  0xda   : > { %v1224_v8 = vpop.permute.xlu0 %1223  ;;  %1213 = vrot.lane.b32.xlu1 %v1167_v62, %s2636_s6  ;;  %v2403_v62 = vld [vmem:[%s2705_s27 + $0x3c] sm:$0xf]  ;;  %v1449_v26 = vrot.slane %v1448_v6, 4  ;;  %v1714_v1 = vrot.slane %v2425_v55, 5 }
  0xdb   : > { %1262 = vst.msk [vmem:[#allocation2 + $0x28] sm:$0xf] %vm1251_vm12, %v1224_v8  ;;  %v2416_v8 = vld [vmem:[%s2705_s27 + $0x70] sm:$0xf]  ;;  %v1466_v11 = vshrl.u32 %v2403_v62, 16  ;;  %v1469_v12 = vshll.u32 %v2403_v62, 16 }
  0xdc   : > { %1211 = vrot.lane.b32.xlu0 %v1164_v3, %s2636_s6  ;;  %v1307_v15 = vpop.permute.xlu1 %1306  ;;  %v1540_v3 = vrot.slane %v1538_v53, 4  ;;  %v1481_v21 = vrot.slane %v1479_v59, 4  ;;  %v1571_v22 = vshll.u32 %v2416_v8, 16  ;;  %v1454_v43 = vsel %vm2729_vm5, %v1449_v26, %v3296_v45  ;;  %v2426_v59 = vld [vmem:[%s2705_s27 + $0x38] sm:$0x1] }
  0xdd   : > { %1354 = vst.msk [vmem:[#allocation2 + $0x4] sm:$0xf] %vm1352_vm13, %v1307_v15  ;;  %v1459_v15 = vrot.slane %v1458_v58, 4  ;;  %v1468_v29 = vrot.slane %v1466_v11, 4  ;;  %v2440_v26 = vld [vmem:[%s2705_s27 + $0x70] sm:$0xf] }
  0xde   : > { %v1305_v19 = vpop.permute.xlu0 %1304  ;;  %1229 = vrot.lane.b32.xlu1 %v1195_v10, %s2636_s6  ;;  %v2393_v10 = vld [vmem:[%s2705_s27 + $0x70] sm:$0xf]  ;;  %v3333_v39 = vrot.slane %v1571_v22, 5 }
  0xdf   : > { %1353 = vst.msk [vmem:[#allocation2] sm:$0xf] %vm1352_vm13, %v1305_v19  ;;  %v2415_v19 = vld [vmem:[%s2705_s27 + $0x6c] sm:$0xf]  ;;  %v1464_v31 = vsel %vm2729_vm5, %v1459_v15, %v1463_v16  ;;  %v2428_v15 = vld [vmem:[%s2705_s27 + $0x40] sm:$0xf] }
  0xe0   : > { %1227 = vrot.lane.b32.xlu0 %v1192_v18, %s2636_s6  ;;  %v1323_v24 = vpop.permute.xlu1 %1322  ;;  %v1554_v18 = vor.u32 %v1553_v63, %v3307_v61  ;;  %v1565_v23 = vshll.u32 %v2415_v19, 16 }
  0xe1   : > { %1362 = vst.msk [vmem:[#allocation2 + $0x24] sm:$0xf] %vm1352_vm13, %v1323_v24  ;;  %v1575_v24 = vshrl.u32 %v2416_v8, 16 }
  0xe2   : > { %v1321_v27 = vpop.permute.xlu0 %1320  ;;  %1217 = vrot.lane.b32.xlu1 %v1174_v20, %s2636_s6  ;;  %v3323_v20 = vrot.slane %v1475_v4, 5  ;;  %v1555_v37 = vrot.slane %v1554_v18, 4 }
  0xe3   : > { %1361 = vst.msk [vmem:[#allocation2 + $0x20] sm:$0xf] %vm1352_vm13, %v1321_v27  ;;  %v1544_v27 = vor.u32 %v1543_v7, %v1540_v3  ;;  %v1577_v41 = vrot.slane %v1575_v24, 4  ;;  %v2424_v7 = vld [vmem:[%s2705_s27 + $0x30] sm:$0xe]  ;;  %v1721_v24 = vrot.slane %v2428_v15, 5 }
  0xe4   : > { %1215 = vrot.lane.b32.xlu0 %v1171_v25, %s2636_s6  ;;  %v1311_v30 = vpop.permute.xlu1 %1310  ;;  %v1560_v51 = vsel %vm2729_vm5, %v1555_v37, %v1559_v35  ;;  %v2444_v18 = vrot.slane %v2424_v7, 9  ;;  %v1749_v35 = vrot.slane %v2440_v26, 5  ;;  %v2441_v37 = vld [vmem:[%s2705_s27 + $0x74] sm:$0x1] }
  0xe5   : > { %1356 = vst.msk [vmem:[#allocation2 + $0xc] sm:$0xf] %vm1352_vm13, %v1311_v30  ;;  %v1471_v30 = vrot.slane %v1469_v12, 5  ;;  %v1545_v47 = vrot.slane %v1544_v27, 4  ;;  %v1578_v45 = vor.u32 %v1577_v41, %v3333_v39 }
  0xe6   : > { %v1309_v34 = vpop.permute.xlu0 %1308  ;;  %1233 = vrot.lane.b32.xlu1 %v1202_v28, %s2636_s6  ;;  %v2392_v28 = vld [vmem:[%s2705_s27 + $0x6c] sm:$0xf]  ;;  %v1715_v27 = vsel %vm2707_vm2, %v2444_v18, %v1714_v1 }
  0xe7   : > { %1355 = vst.msk [vmem:[#allocation2 + $0x8] sm:$0xf] %vm1352_vm13, %v1309_v34  ;;  %v1472_v40 = vor.u32 %v1471_v30, %v1468_v29  ;;  %v1579_v62 = vrot.slane %v1578_v45, 4 }
  0xe8   : > { %1231 = vrot.lane.b32.xlu0 %v1199_v33, %s2636_s6  ;;  %v1327_v38 = vpop.permute.xlu1 %1326  ;;  %v1562_v33 = vshrl.u32 %v2415_v19, 16  ;;  %s3500_s6 = scalar_lea.vmem %s3635_s4, %s2290_s5 }
  0xe9   : > { %1364 = vst.msk [vmem:[#allocation2 + $0x2c] sm:$0xf] %vm1352_vm13, %v1327_v38  ;;  %v1482_v38 = vor.u32 %v1481_v21, %v3323_v20 }
  0xea   : > { %v1325_v44 = vpop.permute.xlu0 %1324  ;;  %1314 = vrot.lane.b32.xlu1 %v2383_v36, %s2637_s7  ;;  %v1485_v36 = vshll.u32 %v2405_v17, 16  ;;  %v1564_v48 = vrot.slane %v1562_v33, 4  ;;  %v2436_v17 = vld [vmem:[%s2705_s27 + $0x60] sm:$0xe]  ;;  %v2427_v33 = vld [vmem:[%s2705_s27 + $0x3c] sm:$0xe] }
  0xeb   : > { %1363 = vst.msk [vmem:[#allocation2 + $0x28] sm:$0xf] %vm1352_vm13, %v1325_v44  ;;  %v2417_v44 = vld [vmem:[%s2705_s27 + $0x74] sm:$0x1]  ;;  %v1483_v52 = vrot.slane %v1482_v38, 4 }
  0xec   : > { %1312 = vrot.lane.b32.xlu0 %v2382_v42, %s2637_s7  ;;  %v1588_v50 = vpop.permute.xlu1 %1587  ;;  %v1581_v53 = vshll.u32 %v2417_v44, 16  ;;  %v1751_v44 = vrot.slane %v1749_v35, 4 }
  0xed   : > { %1635 = vst.msk [vmem:[#allocation2 + $0x4] sm:$0xf] %vm1633_vm14, %v1588_v50  ;;  %v1487_v50 = vrot.slane %v1485_v36, 5 }
  0xee   : > { %v1586_v57 = vpop.permute.xlu0 %1585  ;;  %1330 = vrot.lane.b32.xlu1 %v2391_v46, %s2637_s7  ;;  %v1567_v46 = vrot.slane %v1565_v23, 5 }
  0xef   : > { %1634 = vst.msk [vmem:[#allocation2] sm:$0xf] %vm1633_vm14, %v1586_v57  ;;  %v1473_v57 = vrot.slane %v1472_v40, 4  ;;  %v1488_v63 = vsel %vm2729_vm5, %v1483_v52, %v1487_v50 }
  0xf0   : > { %1328 = vrot.lane.b32.xlu0 %v2390_v56, %s2637_s7  ;;  %v1604_v5 = vpop.permute.xlu1 %1603  ;;  %v1550_v56 = vsel %vm2729_vm5, %v1545_v47, %v3307_v61  ;;  %v1568_v58 = vor.u32 %v1567_v46, %v1564_v48  ;;  %v2437_v61 = vld [vmem:[%s2705_s27 + $0x64] sm:$0xf]  ;;  %v1752_v47 = vrot.slane %v2441_v37, 5 }
  0xf1   : > { %1643 = vst.msk [vmem:[#allocation2 + $0x24] sm:$0xf] %vm1633_vm14, %v1604_v5  ;;  %v1478_v5 = vsel %vm2729_vm5, %v1473_v57, %v3323_v20  ;;  %v1742_v11 = vrot.slane %v2437_v61, 5 }
  0xf2   : > { %v1602_v14 = vpop.permute.xlu0 %1601  ;;  %1318 = vrot.lane.b32.xlu1 %v2385_v2, %s2637_s7  ;;  %v1583_v2 = vrot.slane %v1581_v53, 5  ;;  %v1569_v6 = vrot.slane %v1568_v58, 4  ;;  %v1753_v50 = vsel %vm2707_vm2, %v1751_v44, %v1752_v47 }
  0xf3   : > { %1642 = vst.msk [vmem:[#allocation2 + $0x20] sm:$0xf] %vm1633_vm14, %v1602_v14  ;;  %v2438_v14 = vld [vmem:[%s2705_s27 + $0x68] sm:$0x1]  ;;  %v1744_v21 = vrot.slane %v1742_v11, 4 }
  0xf4   : > { %1316 = vrot.lane.b32.xlu0 %v2384_v9, %s2637_s7  ;;  %v1592_v25 = vpop.permute.xlu1 %1591  ;;  %v1584_v8 = vsel %vm2729_vm5, %v1579_v62, %v1583_v2  ;;  %v1716_v9 = vrot.slane %v1714_v1, 4  ;;  %v1574_v16 = vsel %vm2729_vm5, %v1569_v6, %v3333_v39  ;;  %v1745_v22 = vrot.slane %v2438_v14, 5 }
  0xf5   : > { %1637 = vst.msk [vmem:[#allocation2 + $0xc] sm:$0xf] %vm1633_vm14, %v1592_v25  ;;  %v2429_v25 = vld [vmem:[%s2705_s27 + $0x44] sm:$0x1]  ;;  %v2445_v39 = vrot.slane %v2427_v33, 9 }
  0xf6   : > { %v1590_v34 = vpop.permute.xlu0 %1589  ;;  %1334 = vrot.lane.b32.xlu1 %v2393_v10, %s2637_s7  ;;  %v1717_v10 = vrot.slane %v2426_v59, 5  ;;  %v1746_v23 = vsel %vm2707_vm2, %v1744_v21, %v1745_v22 }
  0xf7   : > { %1636 = vst.msk [vmem:[#allocation2 + $0x8] sm:$0xf] %vm1633_vm14, %v1590_v34  ;;  %v1723_v34 = vrot.slane %v1721_v24, 4  ;;  %v1722_v48 = vsel %vm2707_vm2, %v2445_v39, %v1721_v24 }
  0xf8   : > { %1332 = vrot.lane.b32.xlu0 %v2392_v28, %s2637_s7  ;;  %v1608_v42 = vpop.permute.xlu1 %1607  ;;  %v1718_v20 = vsel %vm2707_vm2, %v1716_v9, %v1717_v10  ;;  %v2448_v28 = vrot.slane %v2436_v17, 9  ;;  %s2640_s7 = smov 120  }
  0xf9   : > { %1645 = vst.msk [vmem:[#allocation2 + $0x2c] sm:$0xf] %vm1633_vm14, %v1608_v42  ;;  %v2439_v42 = vld [vmem:[%s2705_s27 + $0x6c] sm:$0xe] }
  0xfa   : > { %v1606_v49 = vpop.permute.xlu0 %1605  ;;  %1595 = vrot.lane.b32.xlu1 %v1464_v31, %s2638_s8  ;;  %v1724_v31 = vrot.slane %v2429_v25, 5  ;;  %v1743_v38 = vsel %vm2707_vm2, %v2448_v28, %v1742_v11  ;;  %v2449_v46 = vrot.slane %v2439_v42, 9 }
  0xfb   : > { %1644 = vst.msk [vmem:[#allocation2 + $0x28] sm:$0xf] %vm1633_vm14, %v1606_v49 }
  0xfc   : > { %1593 = vrot.lane.b32.xlu0 %v1454_v43, %s2638_s8  ;;  %v1757_v54 = vpop.permute.xlu1 %1756  ;;  %v1725_v43 = vsel %vm2707_vm2, %v1723_v34, %v1724_v31  ;;  %v1750_v52 = vsel %vm2707_vm2, %v2449_v46, %v1749_v35  ;;  %vm2083_vm2 = vcmask 64512  }
  0xfd   : > { %1804 = vst.msk [vmem:[#allocation2 + $0x4] sm:$0xf] %vm1802_vm15, %v1757_v54 }
  0xfe   : > { %v1755_v60 = vpop.permute.xlu0 %1754  ;;  %1611 = vrot.lane.b32.xlu1 %v1560_v51, %s2638_s8 }
  0xff   : > { %1803 = vst.msk [vmem:[#allocation2] sm:$0xf] %vm1802_vm15, %v1755_v60 }
 0x100   : > { %1609 = vrot.lane.b32.xlu0 %v1550_v56, %s2638_s8  ;;  %v1773_v4 = vpop.permute.xlu1 %1772 }
 0x101   : > { %1812 = vst.msk [vmem:[#allocation2 + $0x24] sm:$0xf] %vm1802_vm15, %v1773_v4 }
 0x102   : > { %v1771_v3 = vpop.permute.xlu0 %1770  ;;  %1599 = vrot.lane.b32.xlu1 %v1488_v63, %s2638_s8 }
 0x103   : > { %1811 = vst.msk [vmem:[#allocation2 + $0x20] sm:$0xf] %vm1802_vm15, %v1771_v3 }
 0x104   : > { %1597 = vrot.lane.b32.xlu0 %v1478_v5, %s2638_s8  ;;  %v491_v12 = vpop.permute.xlu1 %490 }
 0x105   : > { %534 = vst.msk [vmem:[#allocation2 + $0x14] sm:$0xf] %vm528_vm7, %v491_v12 }
 0x106   : > { %v489_v13 = vpop.permute.xlu0 %488  ;;  %1615 = vrot.lane.b32.xlu1 %v1584_v8, %s2638_s8  ;;  %v2581_v19 = vld [vmem:[#allocation2] sm:$0xff]  }
 0x107   : > { %533 = vst.msk [vmem:[#allocation2 + $0x10] sm:$0xf] %vm528_vm7, %v489_v13  ;;  %2507 = vmatprep.mubr.msk.bf16.mxu0 %vm1902_vm0, %v2581_v19 }
 0x108   : > { %1613 = vrot.lane.b32.xlu0 %v1574_v16, %s2638_s8  ;;  %v507_v32 = vpop.permute.xlu1 %506 }
 0x109   : > { %542 = vst.msk [vmem:[#allocation2 + $0x34] sm:$0xf] %vm528_vm7, %v507_v32 }
 0x10a   : > { %v505_v29 = vpop.permute.xlu0 %504  ;;  %1764 = vrot.lane.b32.xlu1 %v1718_v20, %s2639_s9  ;;  %v2583_v30 = vld [vmem:[#allocation2 + $0x20] sm:$0xff]  }
 0x10b   : > { %541 = vst.msk [vmem:[#allocation2 + $0x30] sm:$0xf] %vm528_vm7, %v505_v29  ;;  %2515 = vmatprep.mubr.msk.bf16.mxu1 %vm1902_vm0, %v2583_v30 }
 0x10c   : > { %1762 = vrot.lane.b32.xlu0 %v1715_v27, %s2639_s9  ;;  %v1761_v36 = vpop.permute.xlu1 %1760 }
 0x10d   : > { %1806 = vst.msk [vmem:[#allocation2 + $0xc] sm:$0xf] %vm1802_vm15, %v1761_v36 }
 0x10e   : > { %v1759_v41 = vpop.permute.xlu0 %1758  ;;  %1780 = vrot.lane.b32.xlu1 %v1746_v23, %s2639_s9 }
 0x10f   : > { %1805 = vst.msk [vmem:[#allocation2 + $0x8] sm:$0xf] %vm1802_vm15, %v1759_v41 }
 0x110   : > { %1778 = vrot.lane.b32.xlu0 %v1743_v38, %s2639_s9  ;;  %v1777_v40 = vpop.permute.xlu1 %1776 }
 0x111   : > { %1814 = vst.msk [vmem:[#allocation2 + $0x2c] sm:$0xf] %vm1802_vm15, %v1777_v40 }
 0x112   : > { %v1775_v49 = vpop.permute.xlu0 %1774  ;;  %1768 = vrot.lane.b32.xlu1 %v1725_v43, %s2639_s9 }
 0x113   : > { %1813 = vst.msk [vmem:[#allocation2 + $0x28] sm:$0xf] %vm1802_vm15, %v1775_v49 }
 0x114   : > { %1766 = vrot.lane.b32.xlu0 %v1722_v48, %s2639_s9  ;;  %v495_v51 = vpop.permute.xlu1 %494 }
 0x115   : > { %536 = vst.msk [vmem:[#allocation2 + $0x1c] sm:$0xf] %vm528_vm7, %v495_v51 }
 0x116   : > { %v493_v45 = vpop.permute.xlu0 %492  ;;  %1784 = vrot.lane.b32.xlu1 %v1753_v50, %s2639_s9  ;;  %v2586_v53 = vld [vmem:[#allocation2 + $0x8] sm:$0xff]  }
 0x117   : > { %535 = vst.msk [vmem:[#allocation2 + $0x18] sm:$0xf] %vm528_vm7, %v493_v45  ;;  %2508 = vmatmul.mubr.msk.bf16.vlgmr.msra.gmra.mxu0 %vm1902_vm0, %v2586_v53  ;;  %v3487_v53 = vld [vmem:[%s3633_s2] ss:$0 sm:$0xff] }
 0x118   : > { %1782 = vrot.lane.b32.xlu0 %v1750_v52, %s2639_s9  ;;  %v511_v54 = vpop.permute.xlu1 %510 }
 0x119   : > { %544 = vst.msk [vmem:[#allocation2 + $0x3c] sm:$0xf] %vm528_vm7, %v511_v54 }
 0x11a   : > { %v509_v55 = vpop.permute.xlu0 %508  ;;  %v2587_v56 = vld [vmem:[#allocation2 + $0x28] sm:$0xff]  }
 0x11b   : > { %543 = vst.msk [vmem:[#allocation2 + $0x38] sm:$0xf] %vm528_vm7, %v509_v55  ;;  %2516 = vmatmul.mubr.msk.bf16.vlgmr.msra.gmra.mxu1 %vm1902_vm0, %v2587_v56  ;;  %v3492_v55 = vld [vmem:[%s3634_s3] ss:$0 sm:$0xff] }
 0x11c   : > { %v663_v0 = vpop.permute.xlu1 %662 }
 0x11d   : > { %706 = vst.msk [vmem:[#allocation2 + $0x14] sm:$0xf] %vm700_vm8, %v663_v0 }
 0x11e   : > { %v661_v57 = vpop.permute.xlu0 %660 }
 0x11f   : > { %705 = vst.msk [vmem:[#allocation2 + $0x10] sm:$0xf] %vm700_vm8, %v661_v57 }
 0x120   : > { %v679_v58 = vpop.permute.xlu1 %678 }
 0x121   : > { %714 = vst.msk [vmem:[#allocation2 + $0x34] sm:$0xf] %vm700_vm8, %v679_v58 }
 0x122   : > { %v677_v60 = vpop.permute.xlu0 %676 }
 0x123   : > { %713 = vst.msk [vmem:[#allocation2 + $0x30] sm:$0xf] %vm700_vm8, %v677_v60 }
 0x124   : > { %v667_v63 = vpop.permute.xlu1 %666 }
 0x125   : > { %708 = vst.msk [vmem:[#allocation2 + $0x1c] sm:$0xf] %vm700_vm8, %v667_v63 }
 0x126   : > { %v665_v62 = vpop.permute.xlu0 %664 }
 0x127   : > { %707 = vst.msk [vmem:[#allocation2 + $0x18] sm:$0xf] %vm700_vm8, %v665_v62 }
 0x128   : > { %v683_v2 = vpop.permute.xlu1 %682 }
 0x129   : > { %716 = vst.msk [vmem:[#allocation2 + $0x3c] sm:$0xf] %vm700_vm8, %v683_v2 }
 0x12a   : > { %v681_v1 = vpop.permute.xlu0 %680 }
 0x12b   : > { %715 = vst.msk [vmem:[#allocation2 + $0x38] sm:$0xf] %vm700_vm8, %v681_v1 }
 0x12c   : > { %v764_v4 = vpop.permute.xlu1 %763 }
 0x12d   : > { %807 = vst.msk [vmem:[#allocation2 + $0x14] sm:$0xf] %vm801_vm10, %v764_v4 }
 0x12e   : > { %v762_v59 = vpop.permute.xlu0 %761 }
 0x12f   : > { %806 = vst.msk [vmem:[#allocation2 + $0x10] sm:$0xf] %vm801_vm10, %v762_v59 }
 0x130   : > { %v780_v61 = vpop.permute.xlu1 %779 }
 0x131   : > { %815 = vst.msk [vmem:[#allocation2 + $0x34] sm:$0xf] %vm801_vm10, %v780_v61 }
 0x132   : > { %v778_v5 = vpop.permute.xlu0 %777 }
 0x133   : > { %814 = vst.msk [vmem:[#allocation2 + $0x30] sm:$0xf] %vm801_vm10, %v778_v5 }
 0x134   : > { %v768_v6 = vpop.permute.xlu1 %767 }
 0x135   : > { %809 = vst.msk [vmem:[#allocation2 + $0x1c] sm:$0xf] %vm801_vm10, %v768_v6 }
 0x136   : > { %v766_v3 = vpop.permute.xlu0 %765 }
 0x137   : > { %808 = vst.msk [vmem:[#allocation2 + $0x18] sm:$0xf] %vm801_vm10, %v766_v3 }
 0x138   : > { %v784_v7 = vpop.permute.xlu1 %783 }
 0x139   : > { %817 = vst.msk [vmem:[#allocation2 + $0x3c] sm:$0xf] %vm801_vm10, %v784_v7 }
 0x13a   : > { %v782_v8 = vpop.permute.xlu0 %781 }
 0x13b   : > { %816 = vst.msk [vmem:[#allocation2 + $0x38] sm:$0xf] %vm801_vm10, %v782_v8 }
 0x13c   : > { %v1045_v9 = vpop.permute.xlu1 %1044 }
 0x13d   : > { %1088 = vst.msk [vmem:[#allocation2 + $0x14] sm:$0xf] %vm1082_vm11, %v1045_v9 }
 0x13e   : > { %v1043_v10 = vpop.permute.xlu0 %1042 }
 0x13f   : > { %1087 = vst.msk [vmem:[#allocation2 + $0x10] sm:$0xf] %vm1082_vm11, %v1043_v10 }
 0x140   : > { %v1061_v11 = vpop.permute.xlu1 %1060 }
 0x141   : > { %1096 = vst.msk [vmem:[#allocation2 + $0x34] sm:$0xf] %vm1082_vm11, %v1061_v11 }
 0x142   : > { %v1059_v12 = vpop.permute.xlu0 %1058 }
 0x143   : > { %1095 = vst.msk [vmem:[#allocation2 + $0x30] sm:$0xf] %vm1082_vm11, %v1059_v12 }
 0x144   : > { %v1049_v14 = vpop.permute.xlu1 %1048 }
 0x145   : > { %1090 = vst.msk [vmem:[#allocation2 + $0x1c] sm:$0xf] %vm1082_vm11, %v1049_v14 }
 0x146   : > { %v1047_v15 = vpop.permute.xlu0 %1046 }
 0x147   : > { %1089 = vst.msk [vmem:[#allocation2 + $0x18] sm:$0xf] %vm1082_vm11, %v1047_v15 }
 0x148   : > { %v1065_v16 = vpop.permute.xlu1 %1064 }
 0x149   : > { %1098 = vst.msk [vmem:[#allocation2 + $0x3c] sm:$0xf] %vm1082_vm11, %v1065_v16 }
 0x14a   : > { %v1063_v18 = vpop.permute.xlu0 %1062 }
 0x14b   : > { %1097 = vst.msk [vmem:[#allocation2 + $0x38] sm:$0xf] %vm1082_vm11, %v1063_v18 }
 0x14c   : > { %v1214_v13 = vpop.permute.xlu1 %1213 }
 0x14d   : > { %1257 = vst.msk [vmem:[#allocation2 + $0x14] sm:$0xf] %vm1251_vm12, %v1214_v13 }
 0x14e   : > { %v1212_v19 = vpop.permute.xlu0 %1211 }
 0x14f   : > { %1256 = vst.msk [vmem:[#allocation2 + $0x10] sm:$0xf] %vm1251_vm12, %v1212_v19 }
 0x150   : > { %v1230_v17 = vpop.permute.xlu1 %1229 }
 0x151   : > { %1265 = vst.msk [vmem:[#allocation2 + $0x34] sm:$0xf] %vm1251_vm12, %v1230_v17 }
 0x152   : > { %v1228_v20 = vpop.permute.xlu0 %1227 }
 0x153   : > { %1264 = vst.msk [vmem:[#allocation2 + $0x30] sm:$0xf] %vm1251_vm12, %v1228_v20 }
 0x154   : > { %v1218_v21 = vpop.permute.xlu1 %1217 }
 0x155   : > { %1259 = vst.msk [vmem:[#allocation2 + $0x1c] sm:$0xf] %vm1251_vm12, %v1218_v21 }
 0x156   : > { %v1216_v22 = vpop.permute.xlu0 %1215 }
 0x157   : > { %1258 = vst.msk [vmem:[#allocation2 + $0x18] sm:$0xf] %vm1251_vm12, %v1216_v22 }
 0x158   : > { %v1234_v24 = vpop.permute.xlu1 %1233 }
 0x159   : > { %1267 = vst.msk [vmem:[#allocation2 + $0x3c] sm:$0xf] %vm1251_vm12, %v1234_v24 }
 0x15a   : > { %v1232_v32 = vpop.permute.xlu0 %1231 }
 0x15b   : > { %1266 = vst.msk [vmem:[#allocation2 + $0x38] sm:$0xf] %vm1251_vm12, %v1232_v32 }
 0x15c   : > { %v1315_v25 = vpop.permute.xlu1 %1314 }
 0x15d   : > { %1358 = vst.msk [vmem:[#allocation2 + $0x14] sm:$0xf] %vm1352_vm13, %v1315_v25 }
 0x15e   : > { %v1313_v26 = vpop.permute.xlu0 %1312 }
 0x15f   : > { %1357 = vst.msk [vmem:[#allocation2 + $0x10] sm:$0xf] %vm1352_vm13, %v1313_v26 }
 0x160   : > { %v1331_v27 = vpop.permute.xlu1 %1330 }
 0x161   : > { %1366 = vst.msk [vmem:[#allocation2 + $0x34] sm:$0xf] %vm1352_vm13, %v1331_v27 }
 0x162   : > { %v1329_v28 = vpop.permute.xlu0 %1328 }
 0x163   : > { %1365 = vst.msk [vmem:[#allocation2 + $0x30] sm:$0xf] %vm1352_vm13, %v1329_v28 }
 0x164   : > { %v1319_v29 = vpop.permute.xlu1 %1318 }
 0x165   : > { %1360 = vst.msk [vmem:[#allocation2 + $0x1c] sm:$0xf] %vm1352_vm13, %v1319_v29 }
 0x166   : > { %v1317_v30 = vpop.permute.xlu0 %1316 }
 0x167   : > { %1359 = vst.msk [vmem:[#allocation2 + $0x18] sm:$0xf] %vm1352_vm13, %v1317_v30 }
 0x168   : > { %v1335_v33 = vpop.permute.xlu1 %1334 }
 0x169   : > { %1368 = vst.msk [vmem:[#allocation2 + $0x3c] sm:$0xf] %vm1352_vm13, %v1335_v33 }
 0x16a   : > { %v1333_v23 = vpop.permute.xlu0 %1332 }
 0x16b   : > { %1367 = vst.msk [vmem:[#allocation2 + $0x38] sm:$0xf] %vm1352_vm13, %v1333_v23 }
 0x16c   : > { %v1596_v34 = vpop.permute.xlu1 %1595 }
 0x16d   : > { %1639 = vst.msk [vmem:[#allocation2 + $0x14] sm:$0xf] %vm1633_vm14, %v1596_v34 }
 0x16e   : > { %v1594_v31 = vpop.permute.xlu0 %1593 }
 0x16f   : > { %1638 = vst.msk [vmem:[#allocation2 + $0x10] sm:$0xf] %vm1633_vm14, %v1594_v31 }
 0x170   : > { %v1612_v35 = vpop.permute.xlu1 %1611 }
 0x171   : > { %1647 = vst.msk [vmem:[#allocation2 + $0x34] sm:$0xf] %vm1633_vm14, %v1612_v35 }
 0x172   : > { %v1610_v36 = vpop.permute.xlu0 %1609 }
 0x173   : > { %1646 = vst.msk [vmem:[#allocation2 + $0x30] sm:$0xf] %vm1633_vm14, %v1610_v36 }
 0x174   : > { %v1600_v37 = vpop.permute.xlu1 %1599 }
 0x175   : > { %1641 = vst.msk [vmem:[#allocation2 + $0x1c] sm:$0xf] %vm1633_vm14, %v1600_v37 }
 0x176   : > { %v1598_v38 = vpop.permute.xlu0 %1597 }
 0x177   : > { %1640 = vst.msk [vmem:[#allocation2 + $0x18] sm:$0xf] %vm1633_vm14, %v1598_v38 }
 0x178   : > { %v1616_v39 = vpop.permute.xlu1 %1615 }
 0x179   : > { %1649 = vst.msk [vmem:[#allocation2 + $0x3c] sm:$0xf] %vm1633_vm14, %v1616_v39 }
 0x17a   : > { %v1614_v41 = vpop.permute.xlu0 %1613 }
 0x17b   : > { %1648 = vst.msk [vmem:[#allocation2 + $0x38] sm:$0xf] %vm1633_vm14, %v1614_v41 }
 0x17c   : > { %v1765_v42 = vpop.permute.xlu1 %1764 }
 0x17d   : > { %1808 = vst.msk [vmem:[#allocation2 + $0x14] sm:$0xf] %vm1802_vm15, %v1765_v42 }
 0x17e   : > { %v1763_v43 = vpop.permute.xlu0 %1762 }
 0x17f   : > { %1807 = vst.msk [vmem:[#allocation2 + $0x10] sm:$0xf] %vm1802_vm15, %v1763_v43 }
 0x180   : > { %v1781_v44 = vpop.permute.xlu1 %1780 }
 0x181   : > { %1816 = vst.msk [vmem:[#allocation2 + $0x34] sm:$0xf] %vm1802_vm15, %v1781_v44 }
 0x182   : > { %v1779_v47 = vpop.permute.xlu0 %1778 }
 0x183   : > { %1815 = vst.msk [vmem:[#allocation2 + $0x30] sm:$0xf] %vm1802_vm15, %v1779_v47 }
 0x184   : > { %v1769_v40 = vpop.permute.xlu1 %1768 }
 0x185   : > { %1810 = vst.msk [vmem:[#allocation2 + $0x1c] sm:$0xf] %vm1802_vm15, %v1769_v40 }
 0x186   : > { %v1767_v48 = vpop.permute.xlu0 %1766  ;;  %v2588_v46 = vld [vmem:[#allocation2 + $0x10] sm:$0xff]  }
 0x187   : > { %1809 = vst.msk [vmem:[#allocation2 + $0x18] sm:$0xf] %vm1802_vm15, %v1767_v48  ;;  %2511 = vmatprep.mubr.msk.bf16.mxu0 %vm1902_vm0, %v2588_v46 }
 0x188   : > { %v1785_v49 = vpop.permute.xlu1 %1784 }
 0x189   : > { %1818 = vst.msk [vmem:[#allocation2 + $0x3c] sm:$0xf] %vm1802_vm15, %v1785_v49 }
 0x18a   : > { %v1783_v50 = vpop.permute.xlu0 %1782  ;;  %v2589_v51 = vld [vmem:[#allocation2 + $0x30] sm:$0xff]  }
 0x18b   : > { %1817 = vst.msk [vmem:[#allocation2 + $0x38] sm:$0xf] %vm1802_vm15, %v1783_v50  ;;  %2519 = vmatprep.mubr.msk.bf16.mxu1 %vm1902_vm0, %v2589_v51 }
 0x18e   : > { %v2590_v52 = vld [vmem:[#allocation2 + $0x18] sm:$0xff]  }
 0x18f   : > { %2512 = vmatmul.mubr.msk.bf16.gmra.mxu0 %vm1902_vm0, %v2590_v52 }
 0x192   : > { %v2591_v45 = vld [vmem:[#allocation2 + $0x38] sm:$0xff]  }
 0x193   : > { %2520 = vmatmul.mubr.msk.bf16.gmra.mxu1 %vm1902_vm0, %v2591_v45 }
 0x1d7   : > { %v2509_v54 = vpop.f32.mrf.mxu0 }
 0x1d8   : > { %v1974_v56 = vadd.f32 %v2509_v54, %v3487_v53 }
 0x1d9   : > { %v1965_v0 = vpop.f32.mrf.mxu0 }
 0x1da   : > { %vm2030_vm1 = vcmp.gt.f32.partialorder %v1974_v56, 0.0  ;;  %v2053_v57 = vmul.f32 %v3492_v55, %v1974_v56  ;;  %v1966_v58 = vadd.f32 %v3487_v53, %v1965_v0 }
 0x1db   : > { %v2510_v60 = vpop.f32.mrf.mxu0  ;;  %v2517_v63 = vpop.f32.mrf.mxu1 }
 0x1dc   : > { %vm2028_vm3 = vcmp.gt.f32.partialorder %v1966_v58, 0.0  ;;  %v2051_v62 = vmul.f32 %v3492_v55, %v1966_v58  ;;  %v1977_v2 = vadd.f32 %v2510_v60, %v3487_v53  ;;  %v2006_v1 = vadd.f32 %v2517_v63, %v3487_v53 }
 0x1dd   : > { %v1997_v4 = vpop.f32.mrf.mxu1  ;;  %v2069_v59 = vsel %vm2030_vm1, %v1974_v56, %v2053_v57  ;;  %v1968_v61 = vpop.f32.mrf.mxu0 }
 0x1de   : > { %vm2031_vm4 = vcmp.gt.f32.partialorder %v1977_v2, 0.0  ;;  %v2054_v5 = vmul.f32 %v3492_v55, %v1977_v2  ;;  %vm2038_vm5 = vcmp.gt.f32.partialorder %v2006_v1, 0.0  ;;  %v2061_v6 = vmul.f32 %v3492_v55, %v2006_v1  ;;  %2120 = vrot.lane.b32.xlu0 %v2069_v59, %s2640_s7  ;;  %2086 = vst.msk [vmem:[%s3500_s6 + $0x20] sm:$0xff] %vm2083_vm2, %v2069_v59 }
 0x1df   : > { %v1998_v3 = vadd.f32 %v3487_v53, %v1997_v4  ;;  %v1969_v7 = vadd.f32 %v3487_v53, %v1968_v61  ;;  %v2518_v8 = vpop.f32.mrf.mxu1  ;;  %v2067_v9 = vsel %vm2028_vm3, %v1966_v58, %v2051_v62 }
 0x1e0   : > { %v2009_v10 = vadd.f32 %v2518_v8, %v3487_v53  ;;  %v2077_v11 = vsel %vm2038_vm5, %v2006_v1, %v2061_v6  ;;  %v2070_v12 = vsel %vm2031_vm4, %v1977_v2, %v2054_v5  ;;  %2084 = vst.msk [vmem:[%s3500_s6] sm:$0xff] %vm2083_vm2, %v2067_v9 }
 0x1e1   : > { %vm2036_vm6 = vcmp.gt.f32.partialorder %v1998_v3, 0.0  ;;  %v2059_v14 = vmul.f32 %v3492_v55, %v1998_v3  ;;  %vm2029_vm7 = vcmp.gt.f32.partialorder %v1969_v7, 0.0  ;;  %v2052_v15 = vmul.f32 %v3492_v55, %v1969_v7  ;;  %v2000_v16 = vpop.f32.mrf.mxu1  ;;  %2094 = vst.msk [vmem:[%s3500_s6 + $0xa0] sm:$0xff] %vm2083_vm2, %v2077_v11  ;;  %2122 = vrot.lane.b32.xlu1 %v2070_v12, %s2640_s7  ;;  %2087 = vst.msk [vmem:[%s3500_s6 + $0x28] sm:$0xff] %vm2083_vm2, %v2070_v12 }
 0x1e2   : > { %vm2039_vm8 = vcmp.gt.f32.partialorder %v2009_v10, 0.0  ;;  %v2062_v18 = vmul.f32 %v3492_v55, %v2009_v10  ;;  %v2001_v13 = vadd.f32 %v3487_v53, %v2000_v16  ;;  %2136 = vrot.lane.b32.xlu0 %v2077_v11, %s2640_s7 }
 0x1e3   : > { %v2068_v19 = vsel %vm2029_vm7, %v1969_v7, %v2052_v15  ;;  %v2075_v17 = vsel %vm2036_vm6, %v1998_v3, %v2059_v14 }
 0x1e4   : > { %vm2037_vm9 = vcmp.gt.f32.partialorder %v2001_v13, 0.0  ;;  %v2060_v20 = vmul.f32 %v3492_v55, %v2001_v13  ;;  %v2078_v21 = vsel %vm2039_vm8, %v2009_v10, %v2062_v18  ;;  %2085 = vst.msk [vmem:[%s3500_s6 + $0x8] sm:$0xff] %vm2083_vm2, %v2068_v19  ;;  %2092 = vst.msk [vmem:[%s3500_s6 + $0x80] sm:$0xff] %vm2083_vm2, %v2075_v17 }
 0x1e5   : > { %2095 = vst.msk [vmem:[%s3500_s6 + $0xa8] sm:$0xff] %vm2083_vm2, %v2078_v21  ;;  %2138 = vrot.lane.b32.xlu1 %v2078_v21, %s2640_s7 }
 0x1e6   : > { %2116 = vrot.lane.b32.xlu0 %v2067_v9, %s2640_s7  ;;  %v2076_v22 = vsel %vm2037_vm9, %v2001_v13, %v2060_v20 }
 0x1e7   : > { %2093 = vst.msk [vmem:[%s3500_s6 + $0x88] sm:$0xff] %vm2083_vm2, %v2076_v22 }
 0x1e9   : > { %2118 = vrot.lane.b32.xlu1 %v2068_v19, %s2640_s7 }
 0x1ea   : > { %2132 = vrot.lane.b32.xlu0 %v2075_v17, %s2640_s7 }
 0x1ed   : > { %2134 = vrot.lane.b32.xlu1 %v2076_v22, %s2640_s7 }
 0x24f   : > { %v2513_v24 = vpop.f32.mrf.mxu0 }
 0x250   : > { %v2121_v32 = vpop.permute.xlu0 %2120  ;;  %v1990_v25 = vadd.f32 %v2513_v24, %v3487_v53 }
 0x251   : > { %2473 = vst.msk [vmem:[%s3500_s6 + $0x30] sm:$0xff] %vm2083_vm2, %v2121_v32  ;;  %v1981_v26 = vpop.f32.mrf.mxu0 }
 0x252   : > { %vm2034_vm10 = vcmp.gt.f32.partialorder %v1990_v25, 0.0  ;;  %v2057_v27 = vmul.f32 %v3492_v55, %v1990_v25  ;;  %v1982_v28 = vadd.f32 %v3487_v53, %v1981_v26 }
 0x253   : > { %v2521_v29 = vpop.f32.mrf.mxu1  ;;  %v2123_v30 = vpop.permute.xlu1 %2122 }
 0x254   : > { %vm2032_vm11 = vcmp.gt.f32.partialorder %v1982_v28, 0.0  ;;  %v2055_v33 = vmul.f32 %v3492_v55, %v1982_v28  ;;  %v2022_v23 = vadd.f32 %v2521_v29, %v3487_v53  ;;  %v2137_v34 = vpop.permute.xlu0 %2136  ;;  %2474 = vst.msk [vmem:[%s3500_s6 + $0x38] sm:$0xff] %vm2083_vm2, %v2123_v30  ;;  %v2514_v31 = vpop.f32.mrf.mxu0  ;;  %v2073_v35 = vsel %vm2034_vm10, %v1990_v25, %v2057_v27 }
 0x255   : > { %2481 = vst.msk [vmem:[%s3500_s6 + $0xb0] sm:$0xff] %vm2083_vm2, %v2137_v34  ;;  %v1993_v36 = vadd.f32 %v2514_v31, %v3487_v53  ;;  %v2013_v37 = vpop.f32.mrf.mxu1  ;;  %2090 = vst.msk [vmem:[%s3500_s6 + $0x60] sm:$0xff] %vm2083_vm2, %v2073_v35  ;;  %2128 = vrot.lane.b32.xlu0 %v2073_v35, %s2640_s7 }
 0x256   : > { %vm2042_vm12 = vcmp.gt.f32.partialorder %v2022_v23, 0.0  ;;  %v2065_v38 = vmul.f32 %v3492_v55, %v2022_v23  ;;  %v1984_v39 = vpop.f32.mrf.mxu0  ;;  %v2014_v41 = vadd.f32 %v3487_v53, %v2013_v37  ;;  %v2071_v42 = vsel %vm2032_vm11, %v1982_v28, %v2055_v33 }
 0x257   : > { %vm2035_vm13 = vcmp.gt.f32.partialorder %v1993_v36, 0.0  ;;  %v2058_v43 = vmul.f32 %v3492_v55, %v1993_v36  ;;  %v1985_v44 = vadd.f32 %v3487_v53, %v1984_v39  ;;  %v2522_v47 = vpop.f32.mrf.mxu1  ;;  %v2139_v40 = vpop.permute.xlu1 %2138  ;;  %2088 = vst.msk [vmem:[%s3500_s6 + $0x40] sm:$0xff] %vm2083_vm2, %v2071_v42 }
 0x258   : > { %vm2040_vm14 = vcmp.gt.f32.partialorder %v2014_v41, 0.0  ;;  %v2063_v48 = vmul.f32 %v3492_v55, %v2014_v41  ;;  %v2025_v46 = vadd.f32 %v2522_v47, %v3487_v53  ;;  %2482 = vst.msk [vmem:[%s3500_s6 + $0xb8] sm:$0xff] %vm2083_vm2, %v2139_v40  ;;  %v2117_v49 = vpop.permute.xlu0 %2116  ;;  %v2081_v50 = vsel %vm2042_vm12, %v2022_v23, %v2065_v38 }
 0x259   : > { %vm2033_vm15 = vcmp.gt.f32.partialorder %v1985_v44, 0.0  ;;  %v2056_v51 = vmul.f32 %v3492_v55, %v1985_v44  ;;  %2471 = vst.msk [vmem:[%s3500_s6 + $0x10] sm:$0xff] %vm2083_vm2, %v2117_v49  ;;  %v2016_v52 = vpop.f32.mrf.mxu1  ;;  %v2074_v45 = vsel %vm2035_vm13, %v1993_v36, %v2058_v43  ;;  %2124 = vrot.lane.b32.xlu0 %v2071_v42, %s2640_s7  ;;  %2098 = vst.msk [vmem:[%s3500_s6 + $0xe0] sm:$0xff] %vm2083_vm2, %v2081_v50 }
 0x25a   : > { %vm2043_vm0 = vcmp.gt.f32.partialorder %v2025_v46, 0.0  ;;  %v2066_v54 = vmul.f32 %v3492_v55, %v2025_v46  ;;  %v2017_v56 = vadd.f32 %v3487_v53, %v2016_v52  ;;  %2091 = vst.msk [vmem:[%s3500_s6 + $0x68] sm:$0xff] %vm2083_vm2, %v2074_v45  ;;  %2130 = vrot.lane.b32.xlu1 %v2074_v45, %s2640_s7  ;;  %v2079_v0 = vsel %vm2040_vm14, %v2014_v41, %v2063_v48 }
 0x25b   : > { %v2119_v57 = vpop.permute.xlu1 %2118  ;;  %v2072_v58 = vsel %vm2033_vm15, %v1985_v44, %v2056_v51  ;;  %2096 = vst.msk [vmem:[%s3500_s6 + $0xc0] sm:$0xff] %vm2083_vm2, %v2079_v0 }
 0x25c   : > { %vm2041_vm1 = vcmp.gt.f32.partialorder %v2017_v56, 0.0  ;;  %v2064_v60 = vmul.f32 %v3492_v55, %v2017_v56  ;;  %2472 = vst.msk [vmem:[%s3500_s6 + $0x18] sm:$0xff] %vm2083_vm2, %v2119_v57  ;;  %v2133_v63 = vpop.permute.xlu0 %2132  ;;  %2089 = vst.msk [vmem:[%s3500_s6 + $0x48] sm:$0xff] %vm2083_vm2, %v2072_v58  ;;  %v2082_v53 = vsel %vm2043_vm0, %v2025_v46, %v2066_v54 }
 0x25d   : > { %2479 = vst.msk [vmem:[%s3500_s6 + $0x90] sm:$0xff] %vm2083_vm2, %v2133_v63  ;;  %2140 = vrot.lane.b32.xlu0 %v2079_v0, %s2640_s7  ;;  %2099 = vst.msk [vmem:[%s3500_s6 + $0xe8] sm:$0xff] %vm2083_vm2, %v2082_v53 }
 0x25e   : > { %2126 = vrot.lane.b32.xlu1 %v2072_v58, %s2640_s7  ;;  %v2080_v62 = vsel %vm2041_vm1, %v2017_v56, %v2064_v60 }
 0x25f   : > { %v2135_v55 = vpop.permute.xlu1 %2134  ;;  %2097 = vst.msk [vmem:[%s3500_s6 + $0xc8] sm:$0xff] %vm2083_vm2, %v2080_v62 }
 0x260   : > { %2480 = vst.msk [vmem:[%s3500_s6 + $0x98] sm:$0xff] %vm2083_vm2, %v2135_v55 }
 0x261   : > { %2144 = vrot.lane.b32.xlu0 %v2081_v50, %s2640_s7 }
 0x262   : > { %2142 = vrot.lane.b32.xlu1 %v2080_v62, %s2640_s7 }
 0x266   : > { %2146 = vrot.lane.b32.xlu1 %v2082_v53, %s2640_s7 }
 0x2c7   : > { %v2129_v2 = vpop.permute.xlu0 %2128 }
 0x2c8   : > { %2477 = vst.msk [vmem:[%s3500_s6 + $0x70] sm:$0xff] %vm2083_vm2, %v2129_v2 }
 0x2cb   : > { %v2125_v1 = vpop.permute.xlu0 %2124 }
 0x2cc   : > { %v2131_v4 = vpop.permute.xlu1 %2130  ;;  %2475 = vst.msk [vmem:[%s3500_s6 + $0x50] sm:$0xff] %vm2083_vm2, %v2125_v1 }
 0x2cd   : > { %2478 = vst.msk [vmem:[%s3500_s6 + $0x78] sm:$0xff] %vm2083_vm2, %v2131_v4 }
 0x2cf   : > { %v2141_v59 = vpop.permute.xlu0 %2140 }
 0x2d0   : > { %v2127_v61 = vpop.permute.xlu1 %2126  ;;  %2483 = vst.msk [vmem:[%s3500_s6 + $0xd0] sm:$0xff] %vm2083_vm2, %v2141_v59 }
 0x2d1   : > { %2476 = vst.msk [vmem:[%s3500_s6 + $0x58] sm:$0xff] %vm2083_vm2, %v2127_v61 }
 0x2d3   : > { %v2145_v5 = vpop.permute.xlu0 %2144 }
 0x2d4   : > { %v2143_v6 = vpop.permute.xlu1 %2142  ;;  %2485 = vst.msk [vmem:[%s3500_s6 + $0xf0] sm:$0xff] %vm2083_vm2, %v2145_v5 }
 0x2d5   : > { %2484 = vst.msk [vmem:[%s3500_s6 + $0xd8] sm:$0xff] %vm2083_vm2, %v2143_v6 }
 0x2d8   : > { %v2147_v3 = vpop.permute.xlu1 %2146 }
 0x2d9   : > { %2486 = vst.msk [vmem:[%s3500_s6 + $0xf8] sm:$0xff] %vm2083_vm2, %v2147_v3 }
 0x2da PF: > { %s14_s19 = sadd.s32 1, %s2630_s19   ;;  %s3640_s15 = smov %s2622_s17 }
 0x2db   : > { %p11_p7 = scmp.ge.s32.totalorder %s14_s19, 6   ;;  %s3641_s16 = smov %s2626_s18 }
 0x2dc   : > { %s3642_s17 = smov %s3645_s20  ;;  %s3643_s18 = smov %s3649_s21 }
 0x2dd   :  { %13 = sbr.rel (!%p11_p7) target bundleno = 3 (0x3), region = 70 }

</bundles_post_ra>
